<compile_context>
chip_gen: v5e
topology: v5e:2x2
jax: 0.10.0
libtpu: 0.0.40
codegen_flags: <defaults>
</compile_context>

<pallas_src>
import functools

import jax
import jax.numpy as jnp
from jax.experimental import pallas as pl
from jax.experimental.pallas import tpu as pltpu


# ---------------------------------------------------------------------------
# Fused BasicBlock kernel
# ---------------------------------------------------------------------------

def _basic_block_kernel(xb_ref, xr_ref, w1_ref, s1_ref, t1_ref,
                        w2_ref, s2_ref, t2_ref, mask_ref,
                        o_ref, h1_ref, *, wp, m, pad):
    """One batch element per grid step.

    xb_ref   (1, C, m+2*pad) bf16  padded input, channel-major, zero lane margins
    xr_ref   (1, C, m)       f32   padded input (residual), f32 epilogue precision
    w1_ref   (9, F, C)       bf16  conv1 taps (kh*3+kw, out, in)
    w2_ref   (9, F, F)       bf16  conv2 taps
    s*_ref / t*_ref (F, 1)   f32   folded BatchNorm scale / shift
    mask_ref (1, m)          f32   1.0 at interior spatial positions, 0.0 at padding
    o_ref    (1, F, m)       f32   output (padded spatial coords; wrapper crops)
    h1_ref   (F, m+2*pad)    bf16  VMEM scratch staging relu(bn1(conv1(x)))
    """
    f = o_ref.shape[1]

    # ---- conv1: 9 shifted matmuls, f32 accumulation on the MXU ----
    acc = jnp.zeros((f, m), jnp.float32)
    for k in range(9):
        dh, dw = divmod(k, 3)
        off = pad + (dh - 1) * wp + (dw - 1)          # static column shift
        acc += jnp.dot(w1_ref[k], xb_ref[0, :, off:off + m],
                       preferred_element_type=jnp.float32)

    # bn1 + relu (f32), then zero the spatial-padding columns so conv2 sees
    # proper zero padding.
    h1 = jnp.maximum(acc * s1_ref[...] + t1_ref[...], 0.0) * mask_ref[...]

    # Stage h1 into an extended scratch (zero lane margins) so conv2 taps are
    # again plain static column shifts.
    h1_ref[...] = jnp.zeros_like(h1_ref)
    h1_ref[:, pad:pad + m] = h1.astype(h1_ref.dtype)

    # ---- conv2: 9 shifted matmuls ----
    acc2 = jnp.zeros((f, m), jnp.float32)
    for k in range(9):
        dh, dw = divmod(k, 3)
        off = pad + (dh - 1) * wp + (dw - 1)
        acc2 += jnp.dot(w2_ref[k], h1_ref[:, off:off + m],
                        preferred_element_type=jnp.float32)

    # bn2 + residual + relu (all f32).
    y = acc2 * s2_ref[...] + t2_ref[...] + xr_ref[0]
    o_ref[0] = jnp.maximum(y, 0.0).astype(o_ref.dtype)


def _fold_bn(gamma, beta, mean, var, eps):
    """Inference-mode BatchNorm -> per-channel (scale, shift), shaped (F, 1)."""
    scale = gamma * jax.lax.rsqrt(var + eps)
    shift = beta - mean * scale
    return scale.reshape(-1, 1), shift.reshape(-1, 1)


class BasicBlockPallas:
    """Pallas TPU implementation of BasicBlock.forward (stride=1, no downsample)."""

    def __init__(self, key, planes=32, eps=1e-5):
        self.planes, self.eps = planes, eps
        ks = jax.random.split(key, 10)
        fan = planes * 9

        def nrm(k, shape, scale):
            return scale * jax.random.normal(k, shape, jnp.float32)

        # conv3x3 weights (torch layout: out, in, kh, kw), bias-free.
        self.w1 = nrm(ks[0], (planes, planes, 3, 3), 1.0 / jnp.sqrt(fan))
        self.w2 = nrm(ks[1], (planes, planes, 3, 3), 1.0 / jnp.sqrt(fan))
        # BatchNorm (inference) parameters.
        self.g1 = 1.0 + nrm(ks[2], (planes,), 0.1)
        self.b1 = nrm(ks[3], (planes,), 0.1)
        self.m1 = nrm(ks[4], (planes,), 0.1)
        self.v1 = jax.random.uniform(ks[5], (planes,), jnp.float32, 0.5, 1.5)
        self.g2 = 1.0 + nrm(ks[6], (planes,), 0.1)
        self.b2 = nrm(ks[7], (planes,), 0.1)
        self.m2 = nrm(ks[8], (planes,), 0.1)
        self.v2 = jax.random.uniform(ks[9], (planes,), jnp.float32, 0.5, 1.5)

    def forward(self, x):
        B, C, H, W = x.shape
        F = self.planes
        assert C == F, "downsample=None path requires inplanes == planes"

        Hp, Wp = H + 2, W + 2
        M = Hp * Wp                 # padded pixels per batch element (lane axis)
        PAD = 128                   # lane margin (>= Wp+1), 128 keeps stores aligned
        Mext = M + 2 * PAD

        # Wrapper-side layout plumbing only (~1x data, no transposes):
        # NCHW with flattened (padded) spatial IS the channel-major slab we need.
        xp = jnp.pad(x, ((0, 0), (0, 0), (1, 1), (1, 1))).reshape(B, C, M)
        xb = jnp.pad(xp, ((0, 0), (0, 0), (PAD, PAD))).astype(jnp.bfloat16)
        mask = jnp.pad(jnp.ones((H, W), jnp.float32),
                       ((1, 1), (1, 1))).reshape(1, M)

        # Conv taps: (kh, kw, out, in) flattened to (9, F, C), bf16 for the MXU.
        w1t = jnp.transpose(self.w1, (2, 3, 0, 1)).reshape(9, F, C).astype(jnp.bfloat16)
        w2t = jnp.transpose(self.w2, (2, 3, 0, 1)).reshape(9, F, F).astype(jnp.bfloat16)
        s1, t1 = _fold_bn(self.g1, self.b1, self.m1, self.v1, self.eps)
        s2, t2 = _fold_bn(self.g2, self.b2, self.m2, self.v2, self.eps)

        kernel = functools.partial(_basic_block_kernel, wp=Wp, m=M, pad=PAD)
        out = pl.pallas_call(
            kernel,
            grid=(B,),
            in_specs=[
                pl.BlockSpec((1, C, Mext), lambda b: (b, 0, 0)),   # xb (bf16)
                pl.BlockSpec((1, C, M),    lambda b: (b, 0, 0)),   # residual (f32)
                pl.BlockSpec((9, F, C),    lambda b: (0, 0, 0)),   # conv1 taps
                pl.BlockSpec((F, 1),       lambda b: (0, 0)),      # bn1 scale
                pl.BlockSpec((F, 1),       lambda b: (0, 0)),      # bn1 shift
                pl.BlockSpec((9, F, F),    lambda b: (0, 0, 0)),   # conv2 taps
                pl.BlockSpec((F, 1),       lambda b: (0, 0)),      # bn2 scale
                pl.BlockSpec((F, 1),       lambda b: (0, 0)),      # bn2 shift
                pl.BlockSpec((1, M),       lambda b: (0, 0)),      # interior mask
            ],
            out_specs=pl.BlockSpec((1, F, M), lambda b: (b, 0, 0)),
            out_shape=jax.ShapeDtypeStruct((B, F, M), jnp.float32),
            scratch_shapes=[pltpu.VMEM((F, Mext), jnp.bfloat16)],
            compiler_params=pltpu.CompilerParams(
                dimension_semantics=("parallel",)),
        )(xb, xp, w1t, s1, t1, w2t, s2, t2, mask)

        # Drop the spatial padding -> NCHW, matching torch.
        return out.reshape(B, F, Hp, Wp)[:, :, 1:-1, 1:-1]

    __call__ = forward


# ---------------------------------------------------------------------------
# Pure-JAX reference (XLA conv) for a correctness check
# ---------------------------------------------------------------------------

def _reference_forward(x, w1, bn1, w2, bn2, eps):
    def conv(v, w):
        return jax.lax.conv_general_dilated(
            v, w, window_strides=(1, 1), padding=((1, 1), (1, 1)),
            dimension_numbers=("NCHW", "OIHW", "NCHW"))

    def bn(v, p):
        g, b, m, var = p
        s = g * jax.lax.rsqrt(var + eps)
        return v * s[None, :, None, None] + (b - m * s)[None, :, None, None]

    h = jax.nn.relu(bn(conv(x, w1), bn1))
    y = bn(conv(h, w2), bn2) + x
    return jax.nn.relu(y)


if __name__ == "__main__":
    key = jax.random.PRNGKey(0)
    k_in, k_param = jax.random.split(key)

    # inplanes == planes (required by the downsample=None residual add).
    B, C, H, W = 2, 32, 16, 16
    x = jax.random.normal(k_in, (B, C, H, W), jnp.float32)

    block = BasicBlockPallas(k_param, planes=C)
    out = block(x)
    jax.block_until_ready(out)
    assert out.shape == (B, C, H, W)

    ref = _reference_forward(
        x, block.w1, (block.g1, block.b1, block.m1, block.v1),
        block.w2, (block.g2, block.b2, block.m2, block.v2), block.eps)
    max_err = float(jnp.max(jnp.abs(out - ref)))
    # bf16 matmul inputs with f32 accumulation: expected max error ~1e-2.
    assert max_err < 2e-1, f"mismatch vs reference: max abs err = {max_err}"

    print("KERNEL_OK")
</pallas_src>

<mosaic_0001>
module attributes {stable_mosaic.version = 11 : i64} {
  func.func @_basic_block_kernel(%arg0: i32, %arg1: memref<1x32x580xbf16, #tpu.memory_space<vmem>>, %arg2: memref<1x32x324xf32, #tpu.memory_space<vmem>>, %arg3: memref<9x32x32xbf16, #tpu.memory_space<vmem>>, %arg4: memref<32x1xf32, #tpu.memory_space<vmem>>, %arg5: memref<32x1xf32, #tpu.memory_space<vmem>>, %arg6: memref<9x32x32xbf16, #tpu.memory_space<vmem>>, %arg7: memref<32x1xf32, #tpu.memory_space<vmem>>, %arg8: memref<32x1xf32, #tpu.memory_space<vmem>>, %arg9: memref<1x324xf32, #tpu.memory_space<vmem>>, %arg10: memref<1x32x324xf32, #tpu.memory_space<vmem>>, %arg11: memref<32x580xbf16, #tpu.memory_space<vmem>>) attributes {dimension_semantics = [#tpu.dimension_semantics<parallel>], iteration_bounds = array<i64: 2>, scalar_prefetch = 0 : i64, scratch_operands = 1 : i64, tpu.core_type = #tpu.core_type<tc>, window_params = [{transform_indices = @transform_0, window_bounds = array<i64: 1, 32, 580>}, {transform_indices = @transform_1, window_bounds = array<i64: 1, 32, 324>}, {pipeline_mode = #tpu.pipeline_mode<synchronous>, transform_indices = @transform_2, window_bounds = array<i64: 9, 32, 32>}, {pipeline_mode = #tpu.pipeline_mode<synchronous>, transform_indices = @transform_3, window_bounds = array<i64: 32, 1>}, {pipeline_mode = #tpu.pipeline_mode<synchronous>, transform_indices = @transform_4, window_bounds = array<i64: 32, 1>}, {pipeline_mode = #tpu.pipeline_mode<synchronous>, transform_indices = @transform_5, window_bounds = array<i64: 9, 32, 32>}, {pipeline_mode = #tpu.pipeline_mode<synchronous>, transform_indices = @transform_6, window_bounds = array<i64: 32, 1>}, {pipeline_mode = #tpu.pipeline_mode<synchronous>, transform_indices = @transform_7, window_bounds = array<i64: 32, 1>}, {pipeline_mode = #tpu.pipeline_mode<synchronous>, transform_indices = @transform_8, window_bounds = array<i64: 1, 324>}, {transform_indices = @transform_9, window_bounds = array<i64: 1, 32, 324>}]} {
    %cst = arith.constant 0.000000e+00 : f32
    %0 = vector.broadcast %cst : f32 to vector<32x324xf32>
    %c0 = arith.constant 0 : index
    %c0_0 = arith.constant 0 : index
    %c0_1 = arith.constant 0 : index
    %1 = vector.load %arg3[%c0, %c0_0, %c0_1] : memref<9x32x32xbf16, #tpu.memory_space<vmem>>, vector<1x32x32xbf16>
    %2 = vector.shape_cast %1 : vector<1x32x32xbf16> to vector<32x32xbf16>
    %c0_2 = arith.constant 0 : index
    %c0_3 = arith.constant 0 : index
    %c109 = arith.constant 109 : index
    %3 = vector.load %arg1[%c0_2, %c0_3, %c109] : memref<1x32x580xbf16, #tpu.memory_space<vmem>>, vector<1x32x324xbf16>
    %4 = vector.shape_cast %3 : vector<1x32x324xbf16> to vector<32x324xbf16>
    %cst_4 = arith.constant dense<0.000000e+00> : vector<32x324xf32>
    %5 = tpu.matmul %2, %4, %cst_4 {dimension_numbers = #tpu.dot_dimension_numbers<[1], [0], [0], [1], [0, 0, 1, 1], [], []>} : vector<32x32xbf16>, vector<32x324xbf16>, vector<32x324xf32> -> vector<32x324xf32>
    %6 = arith.addf %0, %5 : vector<32x324xf32>
    %c1 = arith.constant 1 : index
    %c0_5 = arith.constant 0 : index
    %c0_6 = arith.constant 0 : index
    %7 = vector.load %arg3[%c1, %c0_5, %c0_6] : memref<9x32x32xbf16, #tpu.memory_space<vmem>>, vector<1x32x32xbf16>
    %8 = vector.shape_cast %7 : vector<1x32x32xbf16> to vector<32x32xbf16>
    %c0_7 = arith.constant 0 : index
    %c0_8 = arith.constant 0 : index
    %c110 = arith.constant 110 : index
    %9 = vector.load %arg1[%c0_7, %c0_8, %c110] : memref<1x32x580xbf16, #tpu.memory_space<vmem>>, vector<1x32x324xbf16>
    %10 = vector.shape_cast %9 : vector<1x32x324xbf16> to vector<32x324xbf16>
    %cst_9 = arith.constant dense<0.000000e+00> : vector<32x324xf32>
    %11 = tpu.matmul %8, %10, %cst_9 {dimension_numbers = #tpu.dot_dimension_numbers<[1], [0], [0], [1], [0, 0, 1, 1], [], []>} : vector<32x32xbf16>, vector<32x324xbf16>, vector<32x324xf32> -> vector<32x324xf32>
    %12 = arith.addf %6, %11 : vector<32x324xf32>
    %c2 = arith.constant 2 : index
    %c0_10 = arith.constant 0 : index
    %c0_11 = arith.constant 0 : index
    %13 = vector.load %arg3[%c2, %c0_10, %c0_11] : memref<9x32x32xbf16, #tpu.memory_space<vmem>>, vector<1x32x32xbf16>
    %14 = vector.shape_cast %13 : vector<1x32x32xbf16> to vector<32x32xbf16>
    %c0_12 = arith.constant 0 : index
    %c0_13 = arith.constant 0 : index
    %c111 = arith.constant 111 : index
    %15 = vector.load %arg1[%c0_12, %c0_13, %c111] : memref<1x32x580xbf16, #tpu.memory_space<vmem>>, vector<1x32x324xbf16>
    %16 = vector.shape_cast %15 : vector<1x32x324xbf16> to vector<32x324xbf16>
    %cst_14 = arith.constant dense<0.000000e+00> : vector<32x324xf32>
    %17 = tpu.matmul %14, %16, %cst_14 {dimension_numbers = #tpu.dot_dimension_numbers<[1], [0], [0], [1], [0, 0, 1, 1], [], []>} : vector<32x32xbf16>, vector<32x324xbf16>, vector<32x324xf32> -> vector<32x324xf32>
    %18 = arith.addf %12, %17 : vector<32x324xf32>
    %c3 = arith.constant 3 : index
    %c0_15 = arith.constant 0 : index
    %c0_16 = arith.constant 0 : index
    %19 = vector.load %arg3[%c3, %c0_15, %c0_16] : memref<9x32x32xbf16, #tpu.memory_space<vmem>>, vector<1x32x32xbf16>
    %20 = vector.shape_cast %19 : vector<1x32x32xbf16> to vector<32x32xbf16>
    %c0_17 = arith.constant 0 : index
    %c0_18 = arith.constant 0 : index
    %c127 = arith.constant 127 : index
    %21 = vector.load %arg1[%c0_17, %c0_18, %c127] : memref<1x32x580xbf16, #tpu.memory_space<vmem>>, vector<1x32x324xbf16>
    %22 = vector.shape_cast %21 : vector<1x32x324xbf16> to vector<32x324xbf16>
    %cst_19 = arith.constant dense<0.000000e+00> : vector<32x324xf32>
    %23 = tpu.matmul %20, %22, %cst_19 {dimension_numbers = #tpu.dot_dimension_numbers<[1], [0], [0], [1], [0, 0, 1, 1], [], []>} : vector<32x32xbf16>, vector<32x324xbf16>, vector<32x324xf32> -> vector<32x324xf32>
    %24 = arith.addf %18, %23 : vector<32x324xf32>
    %c4 = arith.constant 4 : index
    %c0_20 = arith.constant 0 : index
    %c0_21 = arith.constant 0 : index
    %25 = vector.load %arg3[%c4, %c0_20, %c0_21] : memref<9x32x32xbf16, #tpu.memory_space<vmem>>, vector<1x32x32xbf16>
    %26 = vector.shape_cast %25 : vector<1x32x32xbf16> to vector<32x32xbf16>
    %c0_22 = arith.constant 0 : index
    %c0_23 = arith.constant 0 : index
    %c128 = arith.constant 128 : index
    %27 = vector.load %arg1[%c0_22, %c0_23, %c128] : memref<1x32x580xbf16, #tpu.memory_space<vmem>>, vector<1x32x324xbf16>
    %28 = vector.shape_cast %27 : vector<1x32x324xbf16> to vector<32x324xbf16>
    %cst_24 = arith.constant dense<0.000000e+00> : vector<32x324xf32>
    %29 = tpu.matmul %26, %28, %cst_24 {dimension_numbers = #tpu.dot_dimension_numbers<[1], [0], [0], [1], [0, 0, 1, 1], [], []>} : vector<32x32xbf16>, vector<32x324xbf16>, vector<32x324xf32> -> vector<32x324xf32>
    %30 = arith.addf %24, %29 : vector<32x324xf32>
    %c5 = arith.constant 5 : index
    %c0_25 = arith.constant 0 : index
    %c0_26 = arith.constant 0 : index
    %31 = vector.load %arg3[%c5, %c0_25, %c0_26] : memref<9x32x32xbf16, #tpu.memory_space<vmem>>, vector<1x32x32xbf16>
    %32 = vector.shape_cast %31 : vector<1x32x32xbf16> to vector<32x32xbf16>
    %c0_27 = arith.constant 0 : index
    %c0_28 = arith.constant 0 : index
    %c129 = arith.constant 129 : index
    %33 = vector.load %arg1[%c0_27, %c0_28, %c129] : memref<1x32x580xbf16, #tpu.memory_space<vmem>>, vector<1x32x324xbf16>
    %34 = vector.shape_cast %33 : vector<1x32x324xbf16> to vector<32x324xbf16>
    %cst_29 = arith.constant dense<0.000000e+00> : vector<32x324xf32>
    %35 = tpu.matmul %32, %34, %cst_29 {dimension_numbers = #tpu.dot_dimension_numbers<[1], [0], [0], [1], [0, 0, 1, 1], [], []>} : vector<32x32xbf16>, vector<32x324xbf16>, vector<32x324xf32> -> vector<32x324xf32>
    %36 = arith.addf %30, %35 : vector<32x324xf32>
    %c6 = arith.constant 6 : index
    %c0_30 = arith.constant 0 : index
    %c0_31 = arith.constant 0 : index
    %37 = vector.load %arg3[%c6, %c0_30, %c0_31] : memref<9x32x32xbf16, #tpu.memory_space<vmem>>, vector<1x32x32xbf16>
    %38 = vector.shape_cast %37 : vector<1x32x32xbf16> to vector<32x32xbf16>
    %c0_32 = arith.constant 0 : index
    %c0_33 = arith.constant 0 : index
    %c145 = arith.constant 145 : index
    %39 = vector.load %arg1[%c0_32, %c0_33, %c145] : memref<1x32x580xbf16, #tpu.memory_space<vmem>>, vector<1x32x324xbf16>
    %40 = vector.shape_cast %39 : vector<1x32x324xbf16> to vector<32x324xbf16>
    %cst_34 = arith.constant dense<0.000000e+00> : vector<32x324xf32>
    %41 = tpu.matmul %38, %40, %cst_34 {dimension_numbers = #tpu.dot_dimension_numbers<[1], [0], [0], [1], [0, 0, 1, 1], [], []>} : vector<32x32xbf16>, vector<32x324xbf16>, vector<32x324xf32> -> vector<32x324xf32>
    %42 = arith.addf %36, %41 : vector<32x324xf32>
    %c7 = arith.constant 7 : index
    %c0_35 = arith.constant 0 : index
    %c0_36 = arith.constant 0 : index
    %43 = vector.load %arg3[%c7, %c0_35, %c0_36] : memref<9x32x32xbf16, #tpu.memory_space<vmem>>, vector<1x32x32xbf16>
    %44 = vector.shape_cast %43 : vector<1x32x32xbf16> to vector<32x32xbf16>
    %c0_37 = arith.constant 0 : index
    %c0_38 = arith.constant 0 : index
    %c146 = arith.constant 146 : index
    %45 = vector.load %arg1[%c0_37, %c0_38, %c146] : memref<1x32x580xbf16, #tpu.memory_space<vmem>>, vector<1x32x324xbf16>
    %46 = vector.shape_cast %45 : vector<1x32x324xbf16> to vector<32x324xbf16>
    %cst_39 = arith.constant dense<0.000000e+00> : vector<32x324xf32>
    %47 = tpu.matmul %44, %46, %cst_39 {dimension_numbers = #tpu.dot_dimension_numbers<[1], [0], [0], [1], [0, 0, 1, 1], [], []>} : vector<32x32xbf16>, vector<32x324xbf16>, vector<32x324xf32> -> vector<32x324xf32>
    %48 = arith.addf %42, %47 : vector<32x324xf32>
    %c8 = arith.constant 8 : index
    %c0_40 = arith.constant 0 : index
    %c0_41 = arith.constant 0 : index
    %49 = vector.load %arg3[%c8, %c0_40, %c0_41] : memref<9x32x32xbf16, #tpu.memory_space<vmem>>, vector<1x32x32xbf16>
    %50 = vector.shape_cast %49 : vector<1x32x32xbf16> to vector<32x32xbf16>
    %c0_42 = arith.constant 0 : index
    %c0_43 = arith.constant 0 : index
    %c147 = arith.constant 147 : index
    %51 = vector.load %arg1[%c0_42, %c0_43, %c147] : memref<1x32x580xbf16, #tpu.memory_space<vmem>>, vector<1x32x324xbf16>
    %52 = vector.shape_cast %51 : vector<1x32x324xbf16> to vector<32x324xbf16>
    %cst_44 = arith.constant dense<0.000000e+00> : vector<32x324xf32>
    %53 = tpu.matmul %50, %52, %cst_44 {dimension_numbers = #tpu.dot_dimension_numbers<[1], [0], [0], [1], [0, 0, 1, 1], [], []>} : vector<32x32xbf16>, vector<32x324xbf16>, vector<32x324xf32> -> vector<32x324xf32>
    %54 = arith.addf %48, %53 : vector<32x324xf32>
    %c0_45 = arith.constant 0 : index
    %c0_46 = arith.constant 0 : index
    %55 = vector.load %arg4[%c0_45, %c0_46] : memref<32x1xf32, #tpu.memory_space<vmem>>, vector<32x1xf32>
    %56 = vector.broadcast %55 : vector<32x1xf32> to vector<32x324xf32>
    %57 = arith.mulf %54, %56 : vector<32x324xf32>
    %c0_47 = arith.constant 0 : index
    %c0_48 = arith.constant 0 : index
    %58 = vector.load %arg5[%c0_47, %c0_48] : memref<32x1xf32, #tpu.memory_space<vmem>>, vector<32x1xf32>
    %59 = vector.broadcast %58 : vector<32x1xf32> to vector<32x324xf32>
    %60 = arith.addf %57, %59 : vector<32x324xf32>
    %cst_49 = arith.constant 0.000000e+00 : f32
    %61 = vector.broadcast %cst_49 : f32 to vector<32x324xf32>
    %62 = arith.maximumf %60, %61 : vector<32x324xf32>
    %c0_50 = arith.constant 0 : index
    %c0_51 = arith.constant 0 : index
    %63 = vector.load %arg9[%c0_50, %c0_51] : memref<1x324xf32, #tpu.memory_space<vmem>>, vector<1x324xf32>
    %64 = vector.broadcast %63 : vector<1x324xf32> to vector<32x324xf32>
    %65 = arith.mulf %62, %64 : vector<32x324xf32>
    %cst_52 = arith.constant 0.000000e+00 : bf16
    %66 = vector.broadcast %cst_52 : bf16 to vector<32x580xbf16>
    %c0_53 = arith.constant 0 : index
    %c0_54 = arith.constant 0 : index
    %67 = vector.load %arg11[%c0_53, %c0_54] : memref<32x580xbf16, #tpu.memory_space<vmem>>, vector<32x580xbf16>
    tpu.vector_store %arg11[%c0_53, %c0_54], %66 {strides = array<i32>} : memref<32x580xbf16, #tpu.memory_space<vmem>>, vector<32x580xbf16>,
    %68 = arith.truncf %65 : vector<32x324xf32> to vector<32x324xbf16>
    %c0_55 = arith.constant 0 : index
    %c128_56 = arith.constant 128 : index
    %69 = vector.load %arg11[%c0_55, %c128_56] : memref<32x580xbf16, #tpu.memory_space<vmem>>, vector<32x324xbf16>
    tpu.vector_store %arg11[%c0_55, %c128_56], %68 {strides = array<i32>} : memref<32x580xbf16, #tpu.memory_space<vmem>>, vector<32x324xbf16>,
    %cst_57 = arith.constant 0.000000e+00 : f32
    %70 = vector.broadcast %cst_57 : f32 to vector<32x324xf32>
    %c0_58 = arith.constant 0 : index
    %c0_59 = arith.constant 0 : index
    %c0_60 = arith.constant 0 : index
    %71 = vector.load %arg6[%c0_58, %c0_59, %c0_60] : memref<9x32x32xbf16, #tpu.memory_space<vmem>>, vector<1x32x32xbf16>
    %72 = vector.shape_cast %71 : vector<1x32x32xbf16> to vector<32x32xbf16>
    %c0_61 = arith.constant 0 : index
    %c109_62 = arith.constant 109 : index
    %73 = vector.load %arg11[%c0_61, %c109_62] : memref<32x580xbf16, #tpu.memory_space<vmem>>, vector<32x324xbf16>
    %cst_63 = arith.constant dense<0.000000e+00> : vector<32x324xf32>
    %74 = tpu.matmul %72, %73, %cst_63 {dimension_numbers = #tpu.dot_dimension_numbers<[1], [0], [0], [1], [0, 0, 1, 1], [], []>} : vector<32x32xbf16>, vector<32x324xbf16>, vector<32x324xf32> -> vector<32x324xf32>
    %75 = arith.addf %70, %74 : vector<32x324xf32>
    %c1_64 = arith.constant 1 : index
    %c0_65 = arith.constant 0 : index
    %c0_66 = arith.constant 0 : index
    %76 = vector.load %arg6[%c1_64, %c0_65, %c0_66] : memref<9x32x32xbf16, #tpu.memory_space<vmem>>, vector<1x32x32xbf16>
    %77 = vector.shape_cast %76 : vector<1x32x32xbf16> to vector<32x32xbf16>
    %c0_67 = arith.constant 0 : index
    %c110_68 = arith.constant 110 : index
    %78 = vector.load %arg11[%c0_67, %c110_68] : memref<32x580xbf16, #tpu.memory_space<vmem>>, vector<32x324xbf16>
    %cst_69 = arith.constant dense<0.000000e+00> : vector<32x324xf32>
    %79 = tpu.matmul %77, %78, %cst_69 {dimension_numbers = #tpu.dot_dimension_numbers<[1], [0], [0], [1], [0, 0, 1, 1], [], []>} : vector<32x32xbf16>, vector<32x324xbf16>, vector<32x324xf32> -> vector<32x324xf32>
    %80 = arith.addf %75, %79 : vector<32x324xf32>
    %c2_70 = arith.constant 2 : index
    %c0_71 = arith.constant 0 : index
    %c0_72 = arith.constant 0 : index
    %81 = vector.load %arg6[%c2_70, %c0_71, %c0_72] : memref<9x32x32xbf16, #tpu.memory_space<vmem>>, vector<1x32x32xbf16>
    %82 = vector.shape_cast %81 : vector<1x32x32xbf16> to vector<32x32xbf16>
    %c0_73 = arith.constant 0 : index
    %c111_74 = arith.constant 111 : index
    %83 = vector.load %arg11[%c0_73, %c111_74] : memref<32x580xbf16, #tpu.memory_space<vmem>>, vector<32x324xbf16>
    %cst_75 = arith.constant dense<0.000000e+00> : vector<32x324xf32>
    %84 = tpu.matmul %82, %83, %cst_75 {dimension_numbers = #tpu.dot_dimension_numbers<[1], [0], [0], [1], [0, 0, 1, 1], [], []>} : vector<32x32xbf16>, vector<32x324xbf16>, vector<32x324xf32> -> vector<32x324xf32>
    %85 = arith.addf %80, %84 : vector<32x324xf32>
    %c3_76 = arith.constant 3 : index
    %c0_77 = arith.constant 0 : index
    %c0_78 = arith.constant 0 : index
    %86 = vector.load %arg6[%c3_76, %c0_77, %c0_78] : memref<9x32x32xbf16, #tpu.memory_space<vmem>>, vector<1x32x32xbf16>
    %87 = vector.shape_cast %86 : vector<1x32x32xbf16> to vector<32x32xbf16>
    %c0_79 = arith.constant 0 : index
    %c127_80 = arith.constant 127 : index
    %88 = vector.load %arg11[%c0_79, %c127_80] : memref<32x580xbf16, #tpu.memory_space<vmem>>, vector<32x324xbf16>
    %cst_81 = arith.constant dense<0.000000e+00> : vector<32x324xf32>
    %89 = tpu.matmul %87, %88, %cst_81 {dimension_numbers = #tpu.dot_dimension_numbers<[1], [0], [0], [1], [0, 0, 1, 1], [], []>} : vector<32x32xbf16>, vector<32x324xbf16>, vector<32x324xf32> -> vector<32x324xf32>
    %90 = arith.addf %85, %89 : vector<32x324xf32>
    %c4_82 = arith.constant 4 : index
    %c0_83 = arith.constant 0 : index
    %c0_84 = arith.constant 0 : index
    %91 = vector.load %arg6[%c4_82, %c0_83, %c0_84] : memref<9x32x32xbf16, #tpu.memory_space<vmem>>, vector<1x32x32xbf16>
    %92 = vector.shape_cast %91 : vector<1x32x32xbf16> to vector<32x32xbf16>
    %c0_85 = arith.constant 0 : index
    %c128_86 = arith.constant 128 : index
    %93 = vector.load %arg11[%c0_85, %c128_86] : memref<32x580xbf16, #tpu.memory_space<vmem>>, vector<32x324xbf16>
    %cst_87 = arith.constant dense<0.000000e+00> : vector<32x324xf32>
    %94 = tpu.matmul %92, %93, %cst_87 {dimension_numbers = #tpu.dot_dimension_numbers<[1], [0], [0], [1], [0, 0, 1, 1], [], []>} : vector<32x32xbf16>, vector<32x324xbf16>, vector<32x324xf32> -> vector<32x324xf32>
    %95 = arith.addf %90, %94 : vector<32x324xf32>
    %c5_88 = arith.constant 5 : index
    %c0_89 = arith.constant 0 : index
    %c0_90 = arith.constant 0 : index
    %96 = vector.load %arg6[%c5_88, %c0_89, %c0_90] : memref<9x32x32xbf16, #tpu.memory_space<vmem>>, vector<1x32x32xbf16>
    %97 = vector.shape_cast %96 : vector<1x32x32xbf16> to vector<32x32xbf16>
    %c0_91 = arith.constant 0 : index
    %c129_92 = arith.constant 129 : index
    %98 = vector.load %arg11[%c0_91, %c129_92] : memref<32x580xbf16, #tpu.memory_space<vmem>>, vector<32x324xbf16>
    %cst_93 = arith.constant dense<0.000000e+00> : vector<32x324xf32>
    %99 = tpu.matmul %97, %98, %cst_93 {dimension_numbers = #tpu.dot_dimension_numbers<[1], [0], [0], [1], [0, 0, 1, 1], [], []>} : vector<32x32xbf16>, vector<32x324xbf16>, vector<32x324xf32> -> vector<32x324xf32>
    %100 = arith.addf %95, %99 : vector<32x324xf32>
    %c6_94 = arith.constant 6 : index
    %c0_95 = arith.constant 0 : index
    %c0_96 = arith.constant 0 : index
    %101 = vector.load %arg6[%c6_94, %c0_95, %c0_96] : memref<9x32x32xbf16, #tpu.memory_space<vmem>>, vector<1x32x32xbf16>
    %102 = vector.shape_cast %101 : vector<1x32x32xbf16> to vector<32x32xbf16>
    %c0_97 = arith.constant 0 : index
    %c145_98 = arith.constant 145 : index
    %103 = vector.load %arg11[%c0_97, %c145_98] : memref<32x580xbf16, #tpu.memory_space<vmem>>, vector<32x324xbf16>
    %cst_99 = arith.constant dense<0.000000e+00> : vector<32x324xf32>
    %104 = tpu.matmul %102, %103, %cst_99 {dimension_numbers = #tpu.dot_dimension_numbers<[1], [0], [0], [1], [0, 0, 1, 1], [], []>} : vector<32x32xbf16>, vector<32x324xbf16>, vector<32x324xf32> -> vector<32x324xf32>
    %105 = arith.addf %100, %104 : vector<32x324xf32>
    %c7_100 = arith.constant 7 : index
    %c0_101 = arith.constant 0 : index
    %c0_102 = arith.constant 0 : index
    %106 = vector.load %arg6[%c7_100, %c0_101, %c0_102] : memref<9x32x32xbf16, #tpu.memory_space<vmem>>, vector<1x32x32xbf16>
    %107 = vector.shape_cast %106 : vector<1x32x32xbf16> to vector<32x32xbf16>
    %c0_103 = arith.constant 0 : index
    %c146_104 = arith.constant 146 : index
    %108 = vector.load %arg11[%c0_103, %c146_104] : memref<32x580xbf16, #tpu.memory_space<vmem>>, vector<32x324xbf16>
    %cst_105 = arith.constant dense<0.000000e+00> : vector<32x324xf32>
    %109 = tpu.matmul %107, %108, %cst_105 {dimension_numbers = #tpu.dot_dimension_numbers<[1], [0], [0], [1], [0, 0, 1, 1], [], []>} : vector<32x32xbf16>, vector<32x324xbf16>, vector<32x324xf32> -> vector<32x324xf32>
    %110 = arith.addf %105, %109 : vector<32x324xf32>
    %c8_106 = arith.constant 8 : index
    %c0_107 = arith.constant 0 : index
    %c0_108 = arith.constant 0 : index
    %111 = vector.load %arg6[%c8_106, %c0_107, %c0_108] : memref<9x32x32xbf16, #tpu.memory_space<vmem>>, vector<1x32x32xbf16>
    %112 = vector.shape_cast %111 : vector<1x32x32xbf16> to vector<32x32xbf16>
    %c0_109 = arith.constant 0 : index
    %c147_110 = arith.constant 147 : index
    %113 = vector.load %arg11[%c0_109, %c147_110] : memref<32x580xbf16, #tpu.memory_space<vmem>>, vector<32x324xbf16>
    %cst_111 = arith.constant dense<0.000000e+00> : vector<32x324xf32>
    %114 = tpu.matmul %112, %113, %cst_111 {dimension_numbers = #tpu.dot_dimension_numbers<[1], [0], [0], [1], [0, 0, 1, 1], [], []>} : vector<32x32xbf16>, vector<32x324xbf16>, vector<32x324xf32> -> vector<32x324xf32>
    %115 = arith.addf %110, %114 : vector<32x324xf32>
    %c0_112 = arith.constant 0 : index
    %c0_113 = arith.constant 0 : index
    %116 = vector.load %arg7[%c0_112, %c0_113] : memref<32x1xf32, #tpu.memory_space<vmem>>, vector<32x1xf32>
    %117 = vector.broadcast %116 : vector<32x1xf32> to vector<32x324xf32>
    %118 = arith.mulf %115, %117 : vector<32x324xf32>
    %c0_114 = arith.constant 0 : index
    %c0_115 = arith.constant 0 : index
    %119 = vector.load %arg8[%c0_114, %c0_115] : memref<32x1xf32, #tpu.memory_space<vmem>>, vector<32x1xf32>
    %120 = vector.broadcast %119 : vector<32x1xf32> to vector<32x324xf32>
    %121 = arith.addf %118, %120 : vector<32x324xf32>
    %c0_116 = arith.constant 0 : index
    %c0_117 = arith.constant 0 : index
    %c0_118 = arith.constant 0 : index
    %122 = vector.load %arg2[%c0_116, %c0_117, %c0_118] : memref<1x32x324xf32, #tpu.memory_space<vmem>>, vector<1x32x324xf32>
    %123 = vector.shape_cast %122 : vector<1x32x324xf32> to vector<32x324xf32>
    %124 = arith.addf %121, %123 : vector<32x324xf32>
    %cst_119 = arith.constant 0.000000e+00 : f32
    %125 = vector.broadcast %cst_119 : f32 to vector<32x324xf32>
    %126 = arith.maximumf %124, %125 : vector<32x324xf32>
    %c0_120 = arith.constant 0 : index
    %c0_121 = arith.constant 0 : index
    %c0_122 = arith.constant 0 : index
    %127 = vector.load %arg10[%c0_120, %c0_121, %c0_122] : memref<1x32x324xf32, #tpu.memory_space<vmem>>, vector<1x32x324xf32>
    %128 = vector.shape_cast %127 : vector<1x32x324xf32> to vector<32x324xf32>
    %129 = vector.shape_cast %126 : vector<32x324xf32> to vector<1x32x324xf32>
    tpu.vector_store %arg10[%c0_120, %c0_121, %c0_122], %129 {strides = array<i32>} : memref<1x32x324xf32, #tpu.memory_space<vmem>>, vector<1x32x324xf32>,
    return
  }
  func.func @transform_0(%arg0: i32) -> (i32, i32, i32) {
    %c0_i32 = arith.constant 0 : i32
    %c0_i32_0 = arith.constant 0 : i32
    %c0_i32_1 = arith.constant 0 : i32
    return %arg0, %c0_i32, %c0_i32_0 : i32, i32, i32
  }
  func.func @transform_1(%arg0: i32) -> (i32, i32, i32) {
    %c0_i32 = arith.constant 0 : i32
    %c0_i32_0 = arith.constant 0 : i32
    %c0_i32_1 = arith.constant 0 : i32
    return %arg0, %c0_i32, %c0_i32_0 : i32, i32, i32
  }
  func.func @transform_2(%arg0: i32) -> (i32, i32, i32) {
    %c0_i32 = arith.constant 0 : i32
    %c0_i32_0 = arith.constant 0 : i32
    %c0_i32_1 = arith.constant 0 : i32
    %c0_i32_2 = arith.constant 0 : i32
    return %c0_i32, %c0_i32_0, %c0_i32_1 : i32, i32, i32
  }
  func.func @transform_3(%arg0: i32) -> (i32, i32) {
    %c0_i32 = arith.constant 0 : i32
    %c0_i32_0 = arith.constant 0 : i32
    %c0_i32_1 = arith.constant 0 : i32
    return %c0_i32, %c0_i32_0 : i32, i32
  }
  func.func @transform_4(%arg0: i32) -> (i32, i32) {
    %c0_i32 = arith.constant 0 : i32
    %c0_i32_0 = arith.constant 0 : i32
    %c0_i32_1 = arith.constant 0 : i32
    return %c0_i32, %c0_i32_0 : i32, i32
  }
  func.func @transform_5(%arg0: i32) -> (i32, i32, i32) {
    %c0_i32 = arith.constant 0 : i32
    %c0_i32_0 = arith.constant 0 : i32
    %c0_i32_1 = arith.constant 0 : i32
    %c0_i32_2 = arith.constant 0 : i32
    return %c0_i32, %c0_i32_0, %c0_i32_1 : i32, i32, i32
  }
  func.func @transform_6(%arg0: i32) -> (i32, i32) {
    %c0_i32 = arith.constant 0 : i32
    %c0_i32_0 = arith.constant 0 : i32
    %c0_i32_1 = arith.constant 0 : i32
    return %c0_i32, %c0_i32_0 : i32, i32
  }
  func.func @transform_7(%arg0: i32) -> (i32, i32) {
    %c0_i32 = arith.constant 0 : i32
    %c0_i32_0 = arith.constant 0 : i32
    %c0_i32_1 = arith.constant 0 : i32
    return %c0_i32, %c0_i32_0 : i32, i32
  }
  func.func @transform_8(%arg0: i32) -> (i32, i32) {
    %c0_i32 = arith.constant 0 : i32
    %c0_i32_0 = arith.constant 0 : i32
    %c0_i32_1 = arith.constant 0 : i32
    return %c0_i32, %c0_i32_0 : i32, i32
  }
  func.func @transform_9(%arg0: i32) -> (i32, i32, i32) {
    %c0_i32 = arith.constant 0 : i32
    %c0_i32_0 = arith.constant 0 : i32
    %c0_i32_1 = arith.constant 0 : i32
    return %arg0, %c0_i32, %c0_i32_0 : i32, i32, i32
  }
}

</mosaic_0001>

<bundles_post_ra>
// kernel: tpu_custom_call.1
= control target key start
LH: loop header
LB: loop body
LE: loop exit
PB: predicated region body
PF: predicated region fallthrough
CT: control target
= control target key end

     0   :  { %s4787_s0 = inlined_call_operand.hbm [shape: bf16[2,32,580], index: 0, kind: input, shape index: {}]   ;;  %s4788_s1 = inlined_call_operand.hbm [shape: f32[2,32,324], index: 1, kind: input, shape index: {}]   ;;  %s4789_s2 = inlined_call_operand.hbm [shape: bf16[9,32,32], index: 2, kind: input, shape index: {}]   ;;  %s4790_s3 = inlined_call_operand.vmem [shape: f32[32,1], index: 3, kind: input, shape index: {}]   ;;  %s4791_s4 = inlined_call_operand.vmem [shape: f32[32,1], index: 4, kind: input, shape index: {}]   ;;  %s4792_s5 = inlined_call_operand.hbm [shape: bf16[9,32,32], index: 5, kind: input, shape index: {}]   ;;  %s4793_s6 = inlined_call_operand.vmem [shape: f32[32,1], index: 6, kind: input, shape index: {}]   ;;  %s4794_s7 = inlined_call_operand.vmem [shape: f32[32,1], index: 7, kind: input, shape index: {}]   ;;  %s4795_s8 = inlined_call_operand.vmem [shape: f32[1,324], index: 8, kind: input, shape index: {}]   ;;  %s4796_s9 = inlined_call_operand.hbm [shape: f32[2,32,324], index: 9, kind: output, shape index: {}]  }
   0x1   :  { %4809 = sst [smem:[#allocation37_spill]] %s4787_s0 }
   0x2   :  { %4810 = sst [smem:[#allocation38_spill]] %s4789_s2 }
   0x3   :  { %4811 = sst [smem:[#allocation39_spill]] %s4792_s5 }
   0x4   :  { %14 = vsyncpa [#allocation4], 0 }
   0x5   :  { %16 = vsyncpa [#allocation4 + $0x1], 0 }
   0x6   :  { %17 = vsyncpa [#allocation7], 0 }
   0x7   :  { %19 = vsyncpa [#allocation7 + $0x1], 0 }
   0x8   :  { %20 = vsyncpa [#allocation10], 0 }
   0x9   :  { %21 = vsyncpa [#allocation5], 0 }
   0xa   :  { %23 = vsyncpa [#allocation5 + $0x1], 0  ;;  %s3766_s30 = smov 0   ;;  %s3768_s10 = smov 0  }
   0xb   :  { %s3770_s11 = smov 0   ;;  %s3772_s12 = smov 0  }
   0xc LB: > { %4812 = sst [smem:[#allocation17_spill]] %s3683_s30  ;;  %s3787_s13 = sadd.s32 4294967295, %s3695_s12   ;;  %s3695_s12 = sphi %s3772_s12, %s4858_s12   ;;  %s3691_s11 = sphi %s3770_s11, %s4860_s11   ;;  %s3687_s10 = sphi %s3768_s10, %s4862_s10   ;;  %s3683_s30 = sphi %s3766_s30, %s4861_s30  }
   0xd   : > { %4813 = sst [smem:[#allocation18_spill]] %s3691_s11  ;;  %s2953_s14 = sadd.s32 4294967294, %s3695_s12  }
   0xe   : > { %p49_p0 = scmp.ne.s32.totalorder %s3687_s10, %s3683_s30  ;;  %p50_p1 = scmp.eq.s32.totalorder %s3787_s13, 0 }
   0xf   : > { %p246_p2 = scmp.eq.s32.totalorder %s3787_s13, 1  ;;  %p252_p3 = scmp.eq.s32.totalorder %s2953_s14, 1 }
  0x10   : > { %p3796_p4 = por %p50_p1, %p49_p0  ;;  %p2954_p5 = scmp.ge.s32.totalorder %s3695_s12, 1 }
  0x11   : > { %p3801_p6 = por %p252_p3, %p49_p0  ;;  %p259_p7 = scmp.lt.s32.totalorder %s3695_s12, 3 }
  0x12   : > { %s4817_s2 = sld [smem:[#allocation38_spill]]  ;;  %s3697_s21 = smov [#allocation8]  }
  0x13   : > { %s4815_s16 = scalar_select %p3801_p6, 1, 0 }
  0x14   : > { %p3809_p8 = pnand %p2954_p5, %p259_p7  ;;  %s272_s22 = sshll.u32 %s3697_s21, 4  ;;  %s273_s22 = int_to_ptr.vmem [resolvable:$true] %s272_s22 }
  0x15   : > { %4816 = sst [smem:[#allocation19_spill]] %s4815_s16  ;;  %s3698_s26 = smov 64  }
  0x16   : > { %p3419_p9 = pneg %p3809_p8  ;;  %s4819_s5 = sld [smem:[#allocation39_spill]] }
  0x17   : > { %s3699_s27 = smov 4   ;;  %s3700_s28 = smov [#allocation9]  }
  0x18   : > { %s270_s19 = sshll.u32 %s4817_s2, 4  ;;  %p3420_p10 = pnand %p3419_p9, %p50_p1  ;;  %s271_s19 = int_to_ptr.hbm [resolvable:$true] %s270_s19 }
  0x19   : > { %s292_s29 = sshll.u32 %s3700_s28, 4  ;;  %s3822_s14 = sadd.s32 1, %s3695_s12   ;;  %s293_s29 = int_to_ptr.vmem [resolvable:$true] %s292_s29 }
  0x1a   : > { %3422 = dma.hbm_to_vmem [thread:$0]  (!%p3420_p10), %s271_s19, 2304, %s273_s22, [#allocation7], %s3698_s26, %s3698_s26, %s3699_s27  }
  0x1b   : > { %4820 = sst [smem:[#allocation20_spill]] %s3822_s14  ;;  %s36_s17 = sadd.s32 1, %s3691_s11 }
  0x1c   : > { %s290_s25 = sshll.u32 %s4819_s5, 4  ;;  %s33_s18 = ssub.s32 %s3695_s12, %s3822_s14  ;;  %s291_s25 = int_to_ptr.hbm [resolvable:$true] %s290_s25 }
  0x1d   : > { %3425 = dma.hbm_to_vmem [thread:$0]  (!%p3420_p10), %s291_s25, 2304, %s293_s29, [#allocation10], %s3698_s26, %s3698_s26, %s3699_s27  }
  0x1e   : > { %p43_p12 = scmp.ne.s32.totalorder %s3691_s11, %s3687_s10  ;;  %p34_p13 = scmp.eq.s32.totalorder %s33_s18, 0 }
  0x1f   : > { %p44_p0 = scmp.eq.s32.totalorder %s3695_s12, 0  ;;  %p3439_p5 = scmp.lt.s32.totalorder %s3695_s12, 2 }
  0x20   : > { %p3832_p3 = por %p246_p2, %p43_p12  ;;  %s3841_s22 = sand.u32 1, %s3691_s11  }
  0x21   : > { %s3838_s19 = scalar_select %p34_p13, %s3691_s11, %s36_s17  }
  0x22   : > { %s4821_s21 = scalar_select %p3832_p3, 1, 0 }
  0x23   : > { %4823 = sst [smem:[#allocation22_spill]] %s3838_s19  ;;  %p45_p7 = por %p44_p0, %p43_p12 }
  0x24   : > { %4822 = sst [smem:[#allocation21_spill]] %s4821_s21  ;;  %s3398_s23 = smul.u32 80, %s3841_s22 }
  0x25   : > { %s3399_s24 = smul.u32 80, %s3695_s12  ;;  %p3845_p9 = pnand %p3439_p5, %p45_p7 }
  0x26   : > { %s4825_s0 = sld [smem:[#allocation37_spill]]  ;;  %s319_s29 = scalar_lea.vmem [#allocation3], %s3398_s23 }
  0x27   : > { %s327_s17 = sshll.u32 %s319_s29, 4  ;;  %s337_s2 = sand.u32 1, %s3695_s12   ;;  %s328_s17 = int_to_ptr.vmem [resolvable:$true] %s327_s17 }
  0x28   : > { %s316_s5 = scalar_lea.sflag [#allocation4], %s3841_s22  ;;  %p3561_p10 = pneg %p3845_p9 }
  0x2c   : > { %s324_s28 = scalar_lea.hbm %s4825_s0, %s3399_s24  ;;  %s3564_s23 = scalar_lea.hbm %s4825_s0, 160 }
  0x2d   : > { %s325_s18 = sshll.u32 %s324_s28, 4  ;;  %s326_s18 = int_to_ptr.hbm [resolvable:$true] %s325_s18 }
  0x2e   : > { %s3557_s19 = sshra.s32 %s326_s18, 4  ;;  %s3558_s19 = int_to_ptr.hbm [resolvable:$true] %s3557_s19 }
  0x2f   : > { %s3559_s11 = scalar_lea.hbm %s3558_s19, 80  ;;  %p3565_p0 = scmp.lt.s32.totalorder %s3558_s19, %s4825_s0 }
  0x30   : > { %p3560_p2 = scmp.ne.s32.totalorder %s3558_s19, %s3559_s11  ;;  %p3566_p5 = scmp.lt.s32.totalorder %s3564_s23, %s3559_s11 }
  0x32   : > { %p3562_p12 = pnand %p3561_p10, %p3560_p2  ;;  %p3567_p7 = por %p3566_p5, %p3565_p0 }
  0x34   : > { %p3563_p13 = pneg %p3562_p12 }
  0x36   : > { %p3568_p11 = pnand %p3567_p7, %p3563_p13 }
  0x38   : > { %3571 = shalt.err (!%p3568_p11)
}
  0x39   : > { %s3701_s29 = smov 320   ;;  %s3702_s14 = smov 20  }
  0x3a   : > { %3429 = dma.hbm_to_vmem [thread:$0]  (!%p3845_p9), %s326_s18, 1280, %s328_s17, %s316_s5, %s3701_s29, %s3701_s29, %s3702_s14  }
  0x3b   : > { %s3400_s16 = smul.u32 96, %s3841_s22  ;;  %s338_s23 = scalar_lea.sflag [#allocation7], %s337_s2 }
  0x3c   : > { %s3401_s30 = smul.u32 96, %s3695_s12  ;;  %s3594_s22 = scalar_lea.hbm %s4788_s1, 192 }
  0x3d   : > { %s341_s24 = scalar_lea.vmem [#allocation6], %s3400_s16 }
  0x3e   : > { %s346_s21 = scalar_lea.hbm %s4788_s1, %s3401_s30  ;;  %s349_s19 = sshll.u32 %s341_s24, 4  ;;  %s350_s19 = int_to_ptr.vmem [resolvable:$true] %s349_s19 }
  0x3f   : > { %s347_s11 = sshll.u32 %s346_s21, 4  ;;  %s348_s11 = int_to_ptr.hbm [resolvable:$true] %s347_s11 }
  0x40   : > { %s3587_s28 = sshra.s32 %s348_s11, 4  ;;  %s3588_s28 = int_to_ptr.hbm [resolvable:$true] %s3587_s28 }
  0x41   : > { %s3589_s0 = scalar_lea.hbm %s3588_s28, 96  ;;  %p3595_p13 = scmp.lt.s32.totalorder %s3588_s28, %s4788_s1 }
  0x42   : > { %p3590_p11 = scmp.ne.s32.totalorder %s3588_s28, %s3589_s0  ;;  %p3596_p0 = scmp.lt.s32.totalorder %s3594_s22, %s3589_s0 }
  0x44   : > { %p3592_p2 = pnand %p3590_p11, %p3561_p10  ;;  %p3597_p5 = por %p3596_p0, %p3595_p13 }
  0x46   : > { %p3593_p12 = pneg %p3592_p2 }
  0x48   : > { %p3598_p7 = pnand %p3597_p5, %p3593_p12 }
  0x4a   : > { %3601 = shalt.err (!%p3598_p7)
}
  0x4b   : > { %s3703_s2 = smov 384   ;;  %s3704_s16 = smov 24  }
  0x4c   : > { %3432 = dma.hbm_to_vmem [thread:$0]  (!%p3845_p9), %s348_s11, 1536, %s350_s19, %s338_s23, %s3703_s2, %s3703_s2, %s3704_s16  }
  0x4d   : > { %361 = sbr.rel (%p3809_p8) target bundleno = 1094 (0x446), region = 56 }
  0x52   : > { %s3886_s21 = sand.u32 1, %s3687_s10  }
  0x53   : > { %s3402_s18 = smul.u32 80, %s3886_s21  ;;  %s364_s29 = scalar_lea.sflag [#allocation4], %s3886_s21 }
  0x55   : > { %s3890_s0 = scalar_lea.vmem [#allocation3], %s3402_s18 }
  0x56   : > { %3662 = dma.done.wait (%p3796_p4), %s364_s29, 1280  }
  0x57   : > { %3664 = vsyncadd (%p3796_p4), %s364_s29, 4294966016  ;;  %s373_s20 = sand.u32 1, %s3787_s13   ;;  %s3403_s25 = smul.u32 96, %s3886_s21 }
  0x58   : > { %s374_s26 = scalar_lea.sflag [#allocation7], %s373_s20 }
  0x59   : > { %s3900_s27 = scalar_lea.vmem [#allocation6], %s3403_s25 }
  0x5a   : > { %3666 = dma.done.wait (%p3796_p4), %s374_s26, 1536  }
  0x5b   : > { %3668 = vsyncadd (%p3796_p4), %s374_s26, 4294965760 }
  0x5c   : > { %3670 = dma.done.wait (%p50_p1), [#allocation7], 2304  }
  0x5d   : > { %3672 = vsyncadd (%p50_p1), [#allocation7], 4294964992 }
  0x5e   : > { %3674 = dma.done.wait (%p50_p1), [#allocation10], 2304  }
  0x5f   : > { %3676 = vsyncadd (%p50_p1), [#allocation10], 4294964992  ;;  %v2989_v0 = vld [vmem:[%s3890_s0 + $0x28] sm:$0xf]  ;;  %v3338_v1 = vld [vmem:[%s3890_s0 + $0x38] sm:$0xf0] }
  0x60   : > { %v2973_v2 = vld [vmem:[%s3890_s0] sm:$0xf]  ;;  %v2990_v3 = vor.u32 %v3338_v1, %v2989_v0  ;;  %v3334_v4 = vld [vmem:[%s3890_s0 + $0x10] sm:$0xf0]  ;;  %s3705_s15 = smov 18   ;;  %s3706_s24 = smov 19  }
  0x61   : > { %v2974_v5 = vor.u32 %v3334_v4, %v2973_v2  ;;  %v3336_v6 = vld [vmem:[%s3890_s0 + $0x2c] sm:$0xf]  ;;  %v2991_v7 = vld [vmem:[%s3890_s0 + $0x3c] sm:$0xf0]  ;;  %v2997_v8 = vld [vmem:[%s3890_s0 + $0x30] sm:$0xf] }
  0x62   : > { %496 = vrot.lane.b32.xlu0 %v2990_v3, %s3705_s15  ;;  %v3339_v9 = vld [vmem:[%s3890_s0 + $0x40] sm:$0xf0]  ;;  %v2975_v11 = vld [vmem:[%s3890_s0 + $0x14] sm:$0xf0]  ;;  %v2994_v13 = vor.u32 %v3336_v6, %v2991_v7  ;;  %v3337_v15 = vld [vmem:[%s3890_s0 + $0x34] sm:$0xf] }
  0x63   : > { %488 = vrot.lane.b32.xlu1 %v2974_v5, %s3705_s15  ;;  %v3332_v10 = vld [vmem:[%s3890_s0 + $0x4] sm:$0xf]  ;;  %v2998_v12 = vor.u32 %v3339_v9, %v2997_v8  ;;  %v2999_v16 = vld [vmem:[%s3890_s0 + $0x44] sm:$0xf0]  ;;  %v3335_v19 = vld [vmem:[%s3890_s0 + $0x18] sm:$0xf0] }
  0x64   : > { %v2978_v14 = vor.u32 %v3332_v10, %v2975_v11  ;;  %v3002_v17 = vor.u32 %v3337_v15, %v2999_v16  ;;  %v2981_v18 = vld [vmem:[%s3890_s0 + $0x8] sm:$0xf]  ;;  %v3333_v20 = vld [vmem:[%s3890_s0 + $0xc] sm:$0xf]  ;;  %v2983_v21 = vld [vmem:[%s3890_s0 + $0x1c] sm:$0xf0] }
  0x65   : > { %500 = vrot.lane.b32.xlu2 %v2998_v12, %s3705_s15  ;;  %v2982_v22 = vor.u32 %v3335_v19, %v2981_v18  ;;  %v2986_v23 = vor.u32 %v3333_v20, %v2983_v21  ;;  %s3707_s19 = smov 17   ;;  %s3708_s11 = smov 1   ;;  %v3351_v24 = vld [vmem:[%s3890_s0 + $0x30] sm:$0xf]  ;;  %v3075_v25 = vld [vmem:[%s3890_s0 + $0x40] sm:$0xf0] }
  0x66   : > { %v3964_v26 = vor.u32 %v3351_v24, %v3075_v25  ;;  %s3709_s23 = smov 127   ;;  %v3081_v27 = vld [vmem:[%s3890_s0 + $0x34] sm:$0xf]  ;;  %v3353_v28 = vld [vmem:[%s3890_s0 + $0x44] sm:$0xf0]  ;;  %s3710_s28 = smov 111  }
  0x67   : > { %v3970_v29 = vor.u32 %v3353_v28, %v3081_v27  ;;  %v3061_v31 = vld [vmem:[%s3890_s0 + $0x4] sm:$0xf]  ;;  %v3349_v32 = vld [vmem:[%s3890_s0 + $0x14] sm:$0xf0]  ;;  %v3069_v34 = vld [vmem:[%s3890_s0 + $0xc] sm:$0xf] }
  0x68   : > { %v3978_v33 = vor.u32 %v3349_v32, %v3061_v31  ;;  %v3350_v35 = vld [vmem:[%s3890_s0 + $0x1c] sm:$0xf0]  ;;  %v3073_v38 = vld [vmem:[%s3890_s0 + $0x2c] sm:$0xf]  ;;  %s3711_s5 = smov 110   ;;  %vm504_vm0 = vcmask 146432  }
  0x69   : > { %v3984_v36 = vor.u32 %v3350_v35, %v3069_v34  ;;  %v3352_v39 = vld [vmem:[%s3890_s0 + $0x3c] sm:$0xf0]  ;;  %v3348_v50 = vld [vmem:[%s3890_s0 + $0x8] sm:$0xf]  ;;  %v3063_v51 = vld [vmem:[%s3890_s0 + $0x18] sm:$0xf0] }
  0x6a   : > { %498 = vrot.lane.b32.xlu0 %v2994_v13, %s3705_s15  ;;  %v3990_v40 = vor.u32 %v3352_v39, %v3073_v38  ;;  %v4012_v53 = vld [vmem:[#allocation8 + $0x18] sm:$0xff]  ;;  %v3340_v54 = vld [vmem:[#allocation8 + $0x10] sm:$0xff]  ;;  %v4014_v55 = vor.u32 %v3348_v50, %v3063_v51  ;;  %vm517_vm1 = vcmask 261120   ;;  %vm607_vm2 = vcmask 154624   ;;  %s3712_s14 = smov 109   ;;  %v3330_v11 = vld [vmem:[#allocation8] sm:$0xff] }
  0x6b   : > { %490 = vrot.lane.b32.xlu1 %v2978_v14, %s3705_s15  ;;  %vm714_vm3 = vcmask 138240   ;;  %vm833_vm4 = vcmask 7168   ;;  %v3331_v21 = vld [vmem:[#allocation8 + $0x8] sm:$0xff]  ;;  %v3344_v38 = vld [vmem:[#allocation8 + $0x30] sm:$0xff]  ;;  %vm1078_vm5 = vcmask 1039360   ;;  %vm1191_vm6 = vcmask 908288  }
  0x6c   : > { %vm1304_vm7 = vcmask 900096   ;;  %vm1417_vm8 = vcmask 891904   ;;  %vm1609_vm9 = vcmask 551936   ;;  %s4695_s29 = scalar_lea.vmem [#allocation11], %s3403_s25  ;;  %vm2811_vm10 = vcmask 556032   ;;  %s3404_s25 = smul.u32 96, %s3787_s13 }
  0x6d   : > { %502 = vrot.lane.b32.xlu2 %v3002_v17, %s3705_s15  ;;  %s3637_s26 = scalar_lea.hbm %s4796_s9, 192 }
  0x72   : > { %492 = vrot.lane.b32.xlu0 %v2982_v22, %s3705_s15 }
  0x73   : > { %494 = vrot.lane.b32.xlu1 %v2986_v23, %s3705_s15 }
  0x75   : > { %599 = vrot.lane.b32.xlu2 %v2990_v3, %s3706_s24 }
  0x7a   : > { %601 = vrot.lane.b32.xlu0 %v2994_v13, %s3706_s24 }
  0x7b   : > { %603 = vrot.lane.b32.xlu1 %v2998_v12, %s3706_s24 }
  0x7d   : > { %605 = vrot.lane.b32.xlu2 %v3002_v17, %s3706_s24 }
  0x82   : > { %706 = vrot.lane.b32.xlu0 %v2990_v3, %s3707_s19 }
  0x83   : > { %708 = vrot.lane.b32.xlu1 %v2994_v13, %s3707_s19 }
  0x85   : > { %591 = vrot.lane.b32.xlu2 %v2974_v5, %s3706_s24 }
  0x8a   : > { %593 = vrot.lane.b32.xlu0 %v2978_v14, %s3706_s24 }
  0x8b   : > { %595 = vrot.lane.b32.xlu1 %v2982_v22, %s3706_s24 }
  0x8d   : > { %597 = vrot.lane.b32.xlu2 %v2986_v23, %s3706_s24 }
  0x92   : > { %698 = vrot.lane.b32.xlu0 %v2974_v5, %s3707_s19 }
  0x93   : > { %700 = vrot.lane.b32.xlu1 %v2978_v14, %s3707_s19 }
  0x95   : > { %710 = vrot.lane.b32.xlu2 %v2998_v12, %s3707_s19 }
  0x9a   : > { %712 = vrot.lane.b32.xlu0 %v3002_v17, %s3707_s19 }
  0x9b   : > { %825 = vrot.lane.b32.xlu1 %v2990_v3, %s3708_s11 }
  0x9d   : > { %827 = vrot.lane.b32.xlu2 %v2994_v13, %s3708_s11 }
  0xa2   : > { %829 = vrot.lane.b32.xlu0 %v2998_v12, %s3708_s11 }
  0xa3   : > { %702 = vrot.lane.b32.xlu1 %v2982_v22, %s3707_s19 }
  0xa5   : > { %704 = vrot.lane.b32.xlu2 %v2986_v23, %s3707_s19 }
  0xaa   : > { %817 = vrot.lane.b32.xlu0 %v2974_v5, %s3708_s11 }
  0xab   : > { %819 = vrot.lane.b32.xlu1 %v2978_v14, %s3708_s11 }
  0xad   : > { %821 = vrot.lane.b32.xlu2 %v2982_v22, %s3708_s11 }
  0xb2   : > { %831 = vrot.lane.b32.xlu0 %v3002_v17, %s3708_s11 }
  0xb3   : > { %823 = vrot.lane.b32.xlu1 %v2986_v23, %s3708_s11  ;;  %v3342_v23 = vld [vmem:[#allocation8 + $0x20] sm:$0xff] }
  0xb5   : > { %1072 = vrot.lane.b32.xlu2 %v3990_v40, %s3709_s23 }
  0xba   : > { %1074 = vrot.lane.b32.xlu0 %v3964_v26, %s3709_s23 }
  0xbb   : > { %1076 = vrot.lane.b32.xlu1 %v3970_v29, %s3709_s23 }
  0xbd   : > { %1185 = vrot.lane.b32.xlu2 %v3990_v40, %s3710_s28 }
  0xbf   : > { %v501_v30 = vpop.permute.xlu2 %500 }
  0xc2   : > { %1187 = vrot.lane.b32.xlu0 %v3964_v26, %s3710_s28 }
  0xc3   : > { %1066 = vrot.lane.b32.xlu1 %v3978_v33, %s3709_s23 }
  0xc5   : > { %1068 = vrot.lane.b32.xlu2 %v4014_v55, %s3709_s23 }
  0xc7   : > { %v503_v37 = vpop.permute.xlu2 %502 }
  0xc8   : > { %v510_v49 = vsel %vm504_vm0, %v501_v30, %v503_v37 }
  0xca   : > { %1070 = vrot.lane.b32.xlu0 %v3984_v36, %s3709_s23 }
  0xcb   : > { %1179 = vrot.lane.b32.xlu1 %v3978_v33, %s3710_s28 }
  0xcd   : > { %1181 = vrot.lane.b32.xlu2 %v4014_v55, %s3710_s28 }
  0xcf   : > { %v600_v41 = vpop.permute.xlu2 %599 }
  0xd2   : > { %1189 = vrot.lane.b32.xlu0 %v3970_v29, %s3710_s28 }
  0xd3   : > { %1298 = vrot.lane.b32.xlu1 %v3990_v40, %s3711_s5 }
  0xd4   : > { %v497_v42 = vpop.permute.xlu0 %496 }
  0xd5   : > { %v489_v43 = vpop.permute.xlu1 %488  ;;  %1300 = vrot.lane.b32.xlu2 %v3964_v26, %s3711_s5 }
  0xd7   : > { %v606_v45 = vpop.permute.xlu2 %605 }
  0xda   : > { %1302 = vrot.lane.b32.xlu0 %v3970_v29, %s3711_s5 }
  0xdb   : > { %1183 = vrot.lane.b32.xlu1 %v3984_v36, %s3710_s28 }
  0xdc   : > { %v499_v44 = vpop.permute.xlu0 %498 }
  0xdd   : > { %v491_v46 = vpop.permute.xlu1 %490  ;;  %v508_v47 = vsel %vm504_vm0, %v497_v42, %v499_v44  ;;  %v509_v48 = vsel %vm504_vm0, %v499_v44, %v501_v30  ;;  %1292 = vrot.lane.b32.xlu2 %v3978_v33, %s3711_s5 }
  0xde   : > { %530 = vmatpush.bf16.msra.mxu0 %v508_v47  ;;  %3394 = vmatpush.bf16.msra.mxu2 %v508_v47  ;;  %v505_v52 = vsel %vm504_vm0, %v489_v43, %v491_v46 }
  0xdf   : > { %549 = vmatpush.bf16.msra.mxu1 %v509_v48  ;;  %3396 = vmatpush.bf16.msra.mxu3 %v509_v48  ;;  %v592_v59 = vpop.permute.xlu2 %591 }
  0xe2   : > { %531 = vmatpush.bf16.msra.mxu0 %v505_v52  ;;  %3395 = vmatpush.bf16.msra.mxu2 %v505_v52 }
  0xe3   : > { %1294 = vrot.lane.b32.xlu0 %v4014_v55, %s3711_s5  ;;  %1296 = vrot.lane.b32.xlu1 %v3984_v36, %s3711_s5 }
  0xe4   : > { %v493_v56 = vpop.permute.xlu0 %492 }
  0xe5   : > { %v495_v57 = vpop.permute.xlu1 %494  ;;  %3004 = vmatmul.msk.bf16.vlgmr.msra.gmra.mxu2 %vm517_vm1, %v4012_v53  ;;  %v506_v58 = vsel %vm504_vm0, %v491_v46, %v493_v56  ;;  %3003 = vmatmul.msk.bf16.vlgmr.msra.gmra.mxu0 %vm517_vm1, %v3340_v54 }
  0xe6   : > { %568 = vmatpush.bf16.msrb.mxu2 %v510_v49  ;;  %550 = vmatpush.bf16.msra.mxu1 %v506_v58  ;;  %v507_v60 = vsel %vm504_vm0, %v493_v56, %v495_v57 }
  0xe7   : > { %3397 = vmatpush.bf16.msra.mxu3 %v506_v58  ;;  %v598_v2 = vpop.permute.xlu2 %597  ;;  %1411 = vrot.lane.b32.xlu2 %v3990_v40, %s3712_s14 }
  0xe9   : > { %3005 = vmatmul.msk.bf16.vlgmr.msra.gmra.mxu1 %vm517_vm1, %v3340_v54 }
  0xea   : > { %569 = vmatpush.bf16.msrb.mxu2 %v507_v60  ;;  %3006 = vmatmul.msk.bf16.vlgmr.msra.gmra.mxu3 %vm517_vm1, %v4012_v53 }
  0xeb   : > { %1413 = vrot.lane.b32.xlu0 %v3964_v26, %s3712_s14  ;;  %1415 = vrot.lane.b32.xlu1 %v3970_v29, %s3712_s14 }
  0xec   : > { %v602_v61 = vpop.permute.xlu0 %601 }
  0xed   : > { %v604_v62 = vpop.permute.xlu1 %603  ;;  %v611_v63 = vsel %vm607_vm2, %v600_v41, %v602_v61  ;;  %v3343_v41 = vld [vmem:[#allocation8 + $0x28] sm:$0xff] }
  0xee   : > { %632 = vmatpush.bf16.msrb.mxu3 %v611_v63  ;;  %v612_v0 = vsel %vm607_vm2, %v602_v61, %v604_v62  ;;  %v613_v1 = vsel %vm607_vm2, %v604_v62, %v606_v45  ;;  %v3345_v45 = vld [vmem:[#allocation8 + $0x38] sm:$0xff]  ;;  %v3347_v61 = vld [vmem:[#allocation8 + $0x48] sm:$0xff] }
  0xef   : > { %651 = vmatpush.bf16.msrb.mxu0 %v612_v0  ;;  %670 = vmatpush.bf16.msrb.mxu1 %v613_v1  ;;  %v711_v6 = vpop.permute.xlu2 %710 }
  0xf0   : > { %1405 = vrot.lane.b32.xlu2 %v3978_v33, %s3712_s14 }
  0xf3   : > { %1407 = vrot.lane.b32.xlu0 %v4014_v55, %s3712_s14  ;;  %1409 = vrot.lane.b32.xlu1 %v3984_v36, %s3712_s14 }
  0xf4   : > { %v707_v3 = vpop.permute.xlu0 %706 }
  0xf5   : > { %v709_v4 = vpop.permute.xlu1 %708  ;;  %3007 = vmatmul.msk.bf16.vlgmr.msrb.gmra.mxu2 %vm517_vm1, %v3340_v54 }
  0xf6   : > { %v718_v5 = vsel %vm714_vm3, %v707_v3, %v709_v4  ;;  %v719_v10 = vsel %vm714_vm3, %v709_v4, %v711_v6 }
  0xf7   : > { %739 = vmatpush.bf16.msra.mxu2 %v718_v5  ;;  %v828_v17 = vpop.permute.xlu2 %827 }
  0xfc   : > { %v594_v7 = vpop.permute.xlu0 %593 }
  0xfd   : > { %v596_v8 = vpop.permute.xlu1 %595  ;;  %v608_v9 = vsel %vm607_vm2, %v592_v59, %v594_v7 }
  0xfe   : > { %633 = vmatpush.bf16.msrb.mxu3 %v608_v9  ;;  %v609_v12 = vsel %vm607_vm2, %v594_v7, %v596_v8  ;;  %v610_v13 = vsel %vm607_vm2, %v596_v8, %v598_v2  ;;  %v3354_v7 = vld [vmem:[#allocation8 + $0x50] sm:$0xff] }
  0xff   : > { %652 = vmatpush.bf16.msrb.mxu0 %v609_v12  ;;  %671 = vmatpush.bf16.msrb.mxu1 %v610_v13  ;;  %v705_v24 = vpop.permute.xlu2 %704 }
 0x101   : > { %3017 = vmatmul.msk.bf16.vlgmr.msrb.gmra.mxu3 %vm517_vm1, %v3330_v11 }
 0x102   : > { %758 = vmatpush.bf16.msra.mxu3 %v719_v10  ;;  %3019 = vmatmul.msk.bf16.vlgmr.msrb.gmra.mxu0 %vm517_vm1, %v3330_v11 }
 0x103   : > { %3021 = vmatmul.msk.bf16.vlgmr.msrb.gmra.mxu1 %vm517_vm1, %v3330_v11 }
 0x104   : > { %v699_v14 = vpop.permute.xlu0 %698 }
 0x105   : > { %v701_v15 = vpop.permute.xlu1 %700  ;;  %3008 = vmatmul.msk.bf16.gmra.mxu2 %vm517_vm1, %v4012_v53  ;;  %v3346_v53 = vld [vmem:[#allocation8 + $0x40] sm:$0xff] }
 0x106   : > { %v715_v16 = vsel %vm714_vm3, %v699_v14, %v701_v15  ;;  %v3355_v14 = vld [vmem:[#allocation8 + $0x58] sm:$0xff] }
 0x107   : > { %740 = vmatpush.bf16.msra.mxu2 %v715_v16  ;;  %v822_v32 = vpop.permute.xlu2 %821 }
 0x10c   : > { %v713_v18 = vpop.permute.xlu0 %712 }
 0x10d   : > { %v720_v19 = vsel %vm714_vm3, %v711_v6, %v713_v18  ;;  %v826_v20 = vpop.permute.xlu1 %825 }
 0x10e   : > { %v837_v22 = vsel %vm833_vm4, %v826_v20, %v828_v17  ;;  %777 = vmatpush.bf16.msra.mxu0 %v720_v19 }
 0x10f   : > { %858 = vmatpush.bf16.msra.mxu1 %v837_v22 }
 0x111   : > { %3018 = vmatmul.msk.bf16.gmra.mxu3 %vm517_vm1, %v3331_v21 }
 0x112   : > { %3020 = vmatmul.msk.bf16.gmra.mxu0 %vm517_vm1, %v3331_v21 }
 0x113   : > { %3022 = vmatmul.msk.bf16.gmra.mxu1 %vm517_vm1, %v3331_v21 }
 0x114   : > { %v830_v25 = vpop.permute.xlu0 %829 }
 0x115   : > { %v838_v27 = vsel %vm833_vm4, %v828_v17, %v830_v25  ;;  %v703_v28 = vpop.permute.xlu1 %702  ;;  %3031 = vmatmul.msk.bf16.vlgmr.msra.gmra.mxu2 %vm517_vm1, %v3342_v23  ;;  %v3356_v17 = vld [vmem:[#allocation8 + $0x60] sm:$0xff] }
 0x116   : > { %v716_v30 = vsel %vm714_vm3, %v701_v15, %v703_v28  ;;  %v717_v31 = vsel %vm714_vm3, %v703_v28, %v705_v24  ;;  %877 = vmatpush.bf16.msrb.mxu2 %v838_v27 }
 0x117   : > { %759 = vmatpush.bf16.msra.mxu3 %v716_v30  ;;  %778 = vmatpush.bf16.msra.mxu0 %v717_v31 }
 0x11b   : > { %988 = vmatpush.bf16.msrb.mxu0 %v3990_v40 }
 0x11c   : > { %v818_v34 = vpop.permute.xlu0 %817 }
 0x11d   : > { %v820_v35 = vpop.permute.xlu1 %819 }
 0x11e   : > { %v834_v37 = vsel %vm833_vm4, %v818_v34, %v820_v35  ;;  %v835_v39 = vsel %vm833_vm4, %v820_v35, %v822_v32 }
 0x11f   : > { %989 = vmatpush.bf16.msrb.mxu0 %v3978_v33  ;;  %859 = vmatpush.bf16.msra.mxu1 %v834_v37 }
 0x120   : > { %878 = vmatpush.bf16.msrb.mxu2 %v835_v39 }
 0x121   : > { %3033 = vmatmul.msk.bf16.vlgmr.msra.gmra.mxu3 %vm517_vm1, %v3342_v23 }
 0x122   : > { %3035 = vmatmul.msk.bf16.vlgmr.msra.gmra.mxu0 %vm517_vm1, %v3342_v23 }
 0x123   : > { %1007 = vmatpush.bf16.msrb.mxu1 %v3964_v26 }
 0x124   : > { %1026 = vmatpush.bf16.msra.mxu2 %v3970_v29  ;;  %3045 = vmatmul.msk.bf16.vlgmr.msra.gmra.mxu1 %vm517_vm1, %v3344_v38  ;;  %v832_v33 = vpop.permute.xlu0 %831  ;;  %v1073_v29 = vpop.permute.xlu2 %1072 }
 0x125   : > { %3032 = vmatmul.msk.bf16.gmra.mxu2 %vm517_vm1, %v3343_v41  ;;  %v839_v40 = vsel %vm833_vm4, %v830_v25, %v832_v33  ;;  %v824_v42 = vpop.permute.xlu1 %823 }
 0x126   : > { %896 = vmatpush.bf16.msrb.mxu3 %v839_v40  ;;  %v836_v26 = vsel %vm833_vm4, %v822_v32, %v824_v42  ;;  %v4132_v32 = vld [vmem:[#allocation8 + $0x70] sm:$0xff]  ;;  %v3357_v40 = vld [vmem:[#allocation8 + $0x68] sm:$0xff] }
 0x127   : > { %1008 = vmatpush.bf16.msrb.mxu1 %v4014_v55 }
 0x128   : > { %1027 = vmatpush.bf16.msra.mxu2 %v3984_v36 }
 0x12a   : > { %897 = vmatpush.bf16.msrb.mxu3 %v836_v26 }
 0x12c   : > { %v1075_v43 = vpop.permute.xlu0 %1074  ;;  %v1186_v47 = vpop.permute.xlu2 %1185 }
 0x12d   : > { %v1081_v44 = vsel %vm1078_vm5, %v1073_v29, %v1075_v43  ;;  %v1077_v46 = vpop.permute.xlu1 %1076  ;;  %v1541_v29 = vld [vmem:[%s4791_s4 + $0x10] sm:$0xff] }
 0x12e   : > { %1101 = vmatpush.bf16.msra.mxu3 %v1081_v44  ;;  %v1082_v36 = vsel %vm1078_vm5, %v1075_v43, %v1077_v46  ;;  %1139 = vmatpush.bf16.msra.mxu1 %v1077_v46  ;;  %v3713_v43 = vmov 0  }
 0x12f   : > { %1120 = vmatpush.bf16.msra.mxu0 %v1082_v36  ;;  %3496 = vset.pattern.permute.xlu1 %v3713_v43  ;;  %1607 = vst [vmem:[#allocation2] sm:$0xff] %v3713_v43  ;;  %v1506_v36 = vld [vmem:[%s4790_s3 + $0x18] sm:$0xff] }
 0x130   : > { %3495 = vset.pattern.permute.xlu0 %v3713_v43  ;;  %1608 = vst [vmem:[#allocation2 + $0x8] sm:$0xff] %v3713_v43  ;;  %1555 = vperm.xlu1 %3496, %v1541_v29  }
 0x131   : > { %3034 = vmatmul.msk.bf16.gmra.mxu3 %vm517_vm1, %v3343_v41  ;;  %3494 = vset.pattern.permute.xlu2 %v3713_v43  ;;  %1611 = vst [vmem:[#allocation2 + $0x14] sm:$0xff] %v3713_v43 }
 0x132   : > { %3036 = vmatmul.msk.bf16.gmra.mxu0 %vm517_vm1, %v3343_v41  ;;  %1612 = vst [vmem:[#allocation2 + $0x1c] sm:$0xff] %v3713_v43  ;;  %1524 = vperm.xlu0 %3495, %v1506_v36  }
 0x133   : > { %1614 = vst [vmem:[#allocation2 + $0x28] sm:$0xff] %v3713_v43 }
 0x134   : > { %3046 = vmatmul.msk.bf16.gmra.mxu1 %vm517_vm1, %v3345_v45  ;;  %v1188_v48 = vpop.permute.xlu0 %1187  ;;  %v1069_v52 = vpop.permute.xlu2 %1068  ;;  %1615 = vst [vmem:[#allocation2 + $0x30] sm:$0xff] %v3713_v43 }
 0x135   : > { %3047 = vmatmul.msk.bf16.vlgmr.msrb.gmra.mxu2 %vm517_vm1, %v3344_v38  ;;  %v1194_v49 = vsel %vm1191_vm6, %v1186_v47, %v1188_v48  ;;  %v1067_v50 = vpop.permute.xlu1 %1066  ;;  %1617 = vst [vmem:[#allocation2 + $0x3c] sm:$0xff] %v3713_v43 }
 0x136   : > { %1214 = vmatpush.bf16.msrb.mxu2 %v1194_v49  ;;  %v1079_v54 = vsel %vm1078_vm5, %v1067_v50, %v1069_v52  ;;  %1618 = vst [vmem:[#allocation2 + $0x44] sm:$0xff] %v3713_v43  ;;  %v3359_v49 = vld [vmem:[#allocation8 + $0x78] sm:$0xff] }
 0x137   : > { %1102 = vmatpush.bf16.msra.mxu3 %v1079_v54 }
 0x13c   : > { %v1071_v51 = vpop.permute.xlu0 %1070  ;;  %v1182_v59 = vpop.permute.xlu2 %1181 }
 0x13d   : > { %1140 = vmatpush.bf16.msra.mxu1 %v1071_v51  ;;  %v1080_v55 = vsel %vm1078_vm5, %v1069_v52, %v1071_v51  ;;  %v1180_v56 = vpop.permute.xlu1 %1179 }
 0x13e   : > { %1121 = vmatpush.bf16.msra.mxu0 %v1080_v55  ;;  %v1192_v63 = vsel %vm1191_vm6, %v1180_v56, %v1182_v59  ;;  %v1539_v55 = vld [vmem:[%s4791_s4] sm:$0xff] }
 0x13f   : > { %1215 = vmatpush.bf16.msrb.mxu2 %v1192_v63  ;;  %1545 = vperm.xlu0 %3495, %v1539_v55  }
 0x141   : > { %3049 = vmatmul.msk.bf16.vlgmr.msrb.gmra.mxu3 %vm517_vm1, %v3344_v38 }
 0x142   : > { %3083 = vmatmul.msk.bf16.vlgmr.msrb.gmra.mxu0 %vm517_vm1, %v3346_v53 }
 0x144   : > { %3085 = vmatmul.msk.bf16.vlgmr.msrb.gmra.mxu1 %vm517_vm1, %v3346_v53  ;;  %v1190_v57 = vpop.permute.xlu0 %1189  ;;  %v1301_v0 = vpop.permute.xlu2 %1300 }
 0x145   : > { %3048 = vmatmul.msk.bf16.gmra.mxu2 %vm517_vm1, %v3345_v45  ;;  %v1195_v58 = vsel %vm1191_vm6, %v1188_v48, %v1190_v57  ;;  %1252 = vmatpush.bf16.msrb.mxu0 %v1190_v57  ;;  %v1299_v60 = vpop.permute.xlu1 %1298  ;;  %v1503_v48 = vld [vmem:[%s4790_s3] sm:$0xff] }
 0x146   : > { %1233 = vmatpush.bf16.msrb.mxu3 %v1195_v58  ;;  %v1307_v2 = vsel %vm1304_vm7, %v1299_v60, %v1301_v0  ;;  %1509 = vperm.xlu1 %3496, %v1503_v48  }
 0x147   : > { %1327 = vmatpush.bf16.msrb.mxu1 %v1307_v2 }
 0x14c   : > { %v1303_v3 = vpop.permute.xlu0 %1302  ;;  %v1293_v5 = vpop.permute.xlu2 %1292 }
 0x14d   : > { %v1184_v62 = vpop.permute.xlu1 %1183  ;;  %v1308_v4 = vsel %vm1304_vm7, %v1301_v0, %v1303_v3  ;;  %v1505_v0 = vld [vmem:[%s4790_s3 + $0x10] sm:$0xff] }
 0x14e   : > { %v1193_v1 = vsel %vm1191_vm6, %v1182_v59, %v1184_v62  ;;  %1253 = vmatpush.bf16.msrb.mxu0 %v1184_v62  ;;  %1519 = vperm.xlu2 %3494, %v1505_v0  }
 0x14f   : > { %1234 = vmatpush.bf16.msrb.mxu3 %v1193_v1  ;;  %v3360_v1 = vld [vmem:[#allocation8 + $0x80] sm:$0xff] }
 0x151   : > { %3050 = vmatmul.msk.bf16.gmra.mxu3 %vm517_vm1, %v3345_v45 }
 0x152   : > { %3084 = vmatmul.msk.bf16.gmra.mxu0 %vm517_vm1, %v3347_v61 }
 0x154   : > { %3086 = vmatmul.msk.bf16.gmra.mxu1 %vm517_vm1, %v3347_v61  ;;  %v1412_v18 = vpop.permute.xlu2 %1411 }
 0x155   : > { %3087 = vmatmul.msk.bf16.vlgmr.msra.gmra.mxu2 %vm517_vm1, %v3346_v53  ;;  %v1295_v6 = vpop.permute.xlu0 %1294  ;;  %v1297_v10 = vpop.permute.xlu1 %1296 }
 0x156   : > { %1346 = vmatpush.bf16.msra.mxu2 %v1308_v4  ;;  %v1305_v8 = vsel %vm1304_vm7, %v1293_v5, %v1295_v6  ;;  %v1306_v13 = vsel %vm1304_vm7, %v1295_v6, %v1297_v10 }
 0x157   : > { %1328 = vmatpush.bf16.msrb.mxu1 %v1305_v8 }
 0x15a   : > { %1347 = vmatpush.bf16.msra.mxu2 %v1306_v13 }
 0x15c   : > { %v1406_v28 = vpop.permute.xlu2 %1405 }
 0x15d   : > { %v1414_v19 = vpop.permute.xlu0 %1413  ;;  %v1416_v21 = vpop.permute.xlu1 %1415 }
 0x15e   : > { %v1420_v20 = vsel %vm1417_vm8, %v1412_v18, %v1414_v19  ;;  %v1421_v22 = vsel %vm1417_vm8, %v1414_v19, %v1416_v21 }
 0x161   : > { %3097 = vmatmul.msk.bf16.vlgmr.msra.gmra.mxu3 %vm517_vm1, %v3354_v7 }
 0x162   : > { %3099 = vmatmul.msk.bf16.vlgmr.msra.gmra.mxu0 %vm517_vm1, %v3354_v7  ;;  %1365 = vmatpush.bf16.msra.mxu3 %v1303_v3  ;;  %v533_v11 = vpop.f32.mrf.mxu0 }
 0x163   : > { %1440 = vmatpush.bf16.msra.mxu0 %v1420_v20 }
 0x164   : > { %3101 = vmatmul.msk.bf16.vlgmr.msra.gmra.mxu1 %vm517_vm1, %v3354_v7 }
 0x165   : > { %3088 = vmatmul.msk.bf16.gmra.mxu2 %vm517_vm1, %v3347_v61  ;;  %1459 = vmatpush.bf16.msra.mxu1 %v1421_v22  ;;  %v1408_v30 = vpop.permute.xlu0 %1407  ;;  %v1410_v31 = vpop.permute.xlu1 %1409  ;;  %v1540_v61 = vld [vmem:[%s4791_s4 + $0x8] sm:$0xff] }
 0x166   : > { %1366 = vmatpush.bf16.msra.mxu3 %v1297_v10  ;;  %v552_v12 = vpop.f32.mrf.mxu1  ;;  %v1418_v34 = vsel %vm1417_vm8, %v1406_v28, %v1408_v30  ;;  %v1419_v35 = vsel %vm1417_vm8, %v1408_v30, %v1410_v31  ;;  %1550 = vperm.xlu1 %3496, %v1540_v61  }
 0x167   : > { %1441 = vmatpush.bf16.msra.mxu0 %v1418_v34 }
 0x168   : > { %v4113_v9 = vpop.f32.mrf.mxu2 }
 0x169   : > { %1460 = vmatpush.bf16.msra.mxu1 %v1419_v35 }
 0x16a   : > { %v4126_v23 = vpop.f32.mrf.mxu0 }
 0x16d   : > { %v4118_v16 = vpop.f32.mrf.mxu3 }
 0x16e   : > { %v4128_v24 = vpop.f32.mrf.mxu1 }
 0x170   : > { %v4116_v15 = vpop.f32.mrf.mxu2 }
 0x171   : > { %3098 = vmatmul.msk.bf16.gmra.mxu3 %vm517_vm1, %v3355_v14 }
 0x172   : > { %3100 = vmatmul.msk.bf16.gmra.mxu0 %vm517_vm1, %v3355_v14 }
 0x174   : > { %3102 = vmatmul.msk.bf16.gmra.mxu1 %vm517_vm1, %v3355_v14 }
 0x175   : > { %3111 = vmatmul.msk.bf16.vlgmr.msrb.gmra.mxu2 %vm517_vm1, %v3356_v17  ;;  %v4130_v27 = vpop.f32.mrf.mxu3 }
 0x176   : > { %1478 = vmatpush.bf16.msrb.mxu2 %v1416_v21 }
 0x178   : > { %v571_v25 = vpop.f32.mrf.mxu2 }
 0x17a   : > { %1479 = vmatpush.bf16.msrb.mxu2 %v1410_v31 }
 0x17f   : > { %v654_v37 = vpop.f32.mrf.mxu0 }
 0x180   : > { %v673_v38 = vpop.f32.mrf.mxu1  ;;  %v4136_v39 = vadd.f32 %v654_v37, %v552_v12  ;;  %v4138_v33 = vpop.f32.mrf.mxu2 }
 0x181   : > { %v674_v41 = vadd.f32 %v673_v38, %v571_v25  ;;  %3113 = vmatmul.msk.bf16.vlgmr.msrb.gmra.mxu3 %vm517_vm1, %v3356_v17 }
 0x182   : > { %3115 = vmatmul.msk.bf16.vlgmr.msrb.gmra.mxu0 %vm517_vm1, %v3356_v17  ;;  %v3361_v17 = vld [vmem:[#allocation8 + $0x88] sm:$0xff] }
 0x184   : > { %3125 = vmatmul.msk.bf16.vlgmr.msrb.gmra.mxu1 %vm517_vm1, %v4132_v32  ;;  %v635_v42 = vpop.f32.mrf.mxu3 }
 0x185   : > { %v636_v26 = vadd.f32 %v635_v42, %v533_v11  ;;  %3112 = vmatmul.msk.bf16.gmra.mxu2 %vm517_vm1, %v3357_v40 }
 0x187   : > { %v4148_v44 = vpop.f32.mrf.mxu0 }
 0x188   : > { %v4150_v45 = vpop.f32.mrf.mxu1  ;;  %v576_v46 = vpop.f32.mrf.mxu2 }
 0x18c   : > { %v4155_v47 = vpop.f32.mrf.mxu3 }
 0x18f   : > { %v659_v50 = vpop.f32.mrf.mxu0 }
 0x190   : > { %v678_v51 = vpop.f32.mrf.mxu1  ;;  %v660_v52 = vadd.f32 %v659_v50, %v4118_v16  ;;  %v4161_v54 = vpop.f32.mrf.mxu2  ;;  %v1504_v16 = vld [vmem:[%s4790_s3 + $0x8] sm:$0xff] }
 0x191   : > { %v679_v53 = vadd.f32 %v678_v51, %v576_v46  ;;  %4826 = vst [vmem:[#allocation23_spill] sm:$0xff] %v4161_v54  ;;  %3114 = vmatmul.msk.bf16.gmra.mxu3 %vm517_vm1, %v3357_v40 }
 0x192   : > { %3116 = vmatmul.msk.bf16.gmra.mxu0 %vm517_vm1, %v3357_v40 }
 0x194   : > { %3126 = vmatmul.msk.bf16.gmra.mxu1 %vm517_vm1, %v3359_v49  ;;  %v640_v56 = vpop.f32.mrf.mxu3 }
 0x195   : > { %v641_v57 = vadd.f32 %v640_v56, %v4113_v9  ;;  %3127 = vmatmul.msk.bf16.vlgmr.msra.gmra.mxu2 %vm517_vm1, %v4132_v32  ;;  %v1542_v9 = vld [vmem:[%s4791_s4 + $0x18] sm:$0xff] }
 0x196   : > { %1560 = vperm.xlu2 %3494, %v1542_v9  }
 0x197   : > { %v4172_v58 = vpop.f32.mrf.mxu0 }
 0x198   : > { %v4174_v59 = vpop.f32.mrf.mxu1  ;;  %v742_v60 = vpop.f32.mrf.mxu2 }
 0x199   : > { %4827 = vst [vmem:[#allocation24_spill] sm:$0xff] %v4174_v59  ;;  %v790_v62 = vadd.f32 %v742_v60, %v636_v26 }
 0x19c   : > { %v4179_v63 = vpop.f32.mrf.mxu3 }
 0x19e   : > { %1514 = vperm.xlu2 %3494, %v1504_v16  }
 0x19f   : > { %v780_v2 = vpop.f32.mrf.mxu0 }
 0x1a0   : > { %v792_v4 = vadd.f32 %v780_v2, %v674_v41  ;;  %v4184_v6 = vpop.f32.mrf.mxu2 }
 0x1a1   : > { %v861_v3 = vpop.f32.mrf.mxu1  ;;  %3129 = vmatmul.msk.bf16.vlgmr.msra.gmra.mxu3 %vm517_vm1, %v4132_v32 }
 0x1a2   : > { %v909_v5 = vadd.f32 %v861_v3, %v790_v62  ;;  %3139 = vmatmul.msk.bf16.vlgmr.msra.gmra.mxu0 %vm517_vm1, %v3360_v1 }
 0x1a4   : > { %3141 = vmatmul.msk.bf16.vlgmr.msra.gmra.mxu1 %vm517_vm1, %v3360_v1  ;;  %v761_v7 = vpop.f32.mrf.mxu3 }
 0x1a5   : > { %v791_v8 = vadd.f32 %v761_v7, %v4136_v39  ;;  %3128 = vmatmul.msk.bf16.gmra.mxu2 %vm517_vm1, %v3359_v49 }
 0x1a7   : > { %v4195_v10 = vpop.f32.mrf.mxu0 }
 0x1a8   : > { %v747_v12 = vpop.f32.mrf.mxu2 }
 0x1a9   : > { %v4197_v11 = vpop.f32.mrf.mxu1  ;;  %v796_v13 = vadd.f32 %v747_v12, %v641_v57 }
 0x1ac   : > { %v4199_v14 = vpop.f32.mrf.mxu3 }
 0x1af   : > { %v785_v18 = vpop.f32.mrf.mxu0 }
 0x1b0   : > { %v798_v20 = vadd.f32 %v785_v18, %v679_v53  ;;  %v4204_v22 = vpop.f32.mrf.mxu2 }
 0x1b1   : > { %v866_v19 = vpop.f32.mrf.mxu1  ;;  %3130 = vmatmul.msk.bf16.gmra.mxu3 %vm517_vm1, %v3359_v49 }
 0x1b2   : > { %v915_v21 = vadd.f32 %v866_v19, %v796_v13  ;;  %3140 = vmatmul.msk.bf16.gmra.mxu0 %vm517_vm1, %v3361_v17 }
 0x1b4   : > { %3142 = vmatmul.msk.bf16.gmra.mxu1 %vm517_vm1, %v3361_v17  ;;  %v766_v25 = vpop.f32.mrf.mxu3 }
 0x1b5   : > { %v797_v28 = vadd.f32 %v766_v25, %v660_v52  ;;  %3143 = vmatmul.msk.bf16.vlgmr.msrb.gmra.mxu2 %vm517_vm1, %v3360_v1 }
 0x1b7   : > { %v4210_v30 = vpop.f32.mrf.mxu0 }
 0x1b8   : > { %4828 = vst [vmem:[#allocation25_spill] sm:$0xff] %v4210_v30  ;;  %v880_v32 = vpop.f32.mrf.mxu2 }
 0x1b9   : > { %v4212_v31 = vpop.f32.mrf.mxu1  ;;  %v910_v34 = vadd.f32 %v880_v32, %v791_v8 }
 0x1bc   : > { %v4214_v35 = vpop.f32.mrf.mxu3 }
 0x1bf   : > { %v991_v37 = vpop.f32.mrf.mxu0 }
 0x1c0   : > { %v4216_v39 = vadd.f32 %v991_v37, %v909_v5  ;;  %v4220_v40 = vpop.f32.mrf.mxu2 }
 0x1c1   : > { %v1010_v38 = vpop.f32.mrf.mxu1 }
 0x1c2   : > { %v4218_v41 = vadd.f32 %v1010_v38, %v910_v34 }
 0x1c4   : > { %v899_v42 = vpop.f32.mrf.mxu3 }
 0x1c5   : > { %v911_v26 = vadd.f32 %v899_v42, %v792_v4  ;;  %3144 = vmatmul.msk.bf16.gmra.mxu2 %vm517_vm1, %v3361_v17  ;;  %v3155_v42 = vld [vmem:[#allocation2] sm:$0xf] }
 0x1c7   : > { %v4223_v29 = vpop.f32.mrf.mxu0 }
 0x1c8   : > { %v885_v46 = vpop.f32.mrf.mxu2 }
 0x1c9   : > { %v4225_v43 = vpop.f32.mrf.mxu1  ;;  %v916_v36 = vadd.f32 %v885_v46, %v797_v28 }
 0x1cc   : > { %v4227_v48 = vpop.f32.mrf.mxu3 }
 0x1cf   : > { %v996_v49 = vpop.f32.mrf.mxu0 }
 0x1d0   : > { %v4229_v51 = vadd.f32 %v996_v49, %v915_v21  ;;  %v4233_v53 = vpop.f32.mrf.mxu2 }
 0x1d1   : > { %v1015_v50 = vpop.f32.mrf.mxu1 }
 0x1d2   : > { %v4231_v52 = vadd.f32 %v1015_v50, %v916_v36 }
 0x1d4   : > { %v904_v55 = vpop.f32.mrf.mxu3 }
 0x1d5   : > { %v917_v56 = vadd.f32 %v904_v55, %v798_v20 }
 0x1d7   : > { %v4235_v57 = vpop.f32.mrf.mxu0 }
 0x1d8   : > { %v1029_v61 = vpop.f32.mrf.mxu2 }
 0x1d9   : > { %v4237_v60 = vpop.f32.mrf.mxu1  ;;  %v1041_v62 = vadd.f32 %v1029_v61, %v911_v26  ;;  %v3366_v26 = vld [vmem:[#allocation2 + $0x10] sm:$0xf0] }
 0x1da   : > { %v4265_v46 = vor.u32 %v3366_v26, %v3155_v42  ;;  %v4281_v42 = vpop.permute.xlu1 %1555 }
 0x1dc   : > { %v4239_v0 = vpop.f32.mrf.mxu3  ;;  %4834 = vst [vmem:[#allocation31_spill] sm:$0xff] %v4265_v46  ;;  %1695 = vrot.lane.b32.xlu1 %v4265_v46, %s3705_s15  ;;  %v4285_v46 = vpop.permute.xlu0 %1524 }
 0x1dd   : > { %4829 = vst [vmem:[#allocation26_spill] sm:$0xff] %v4239_v0 }
 0x1de   : > { %4838 = vst [vmem:[#allocation35_spill] sm:$0xff] %v4285_v46 }
 0x1df   : > { %v1123_v1 = vpop.f32.mrf.mxu0 }
 0x1e0   : > { %v4243_v4 = vpop.f32.mrf.mxu2  ;;  %v1153_v30 = vadd.f32 %v1123_v1, %v4218_v41 }
 0x1e1   : > { %v1142_v2 = vpop.f32.mrf.mxu1 }
 0x1e2   : > { %v4241_v3 = vadd.f32 %v1142_v2, %v1041_v62 }
 0x1e4   : > { %v1104_v5 = vpop.f32.mrf.mxu3 }
 0x1e7   : > { %v4245_v7 = vpop.f32.mrf.mxu0 }
 0x1e8   : > { %v1034_v9 = vpop.f32.mrf.mxu2 }
 0x1e9   : > { %v4247_v8 = vpop.f32.mrf.mxu1  ;;  %v1047_v12 = vadd.f32 %v1034_v9, %v917_v56  ;;  %v4279_v9 = vpop.permute.xlu2 %1519 }
 0x1ea   : > { %4830 = vst [vmem:[#allocation27_spill] sm:$0xff] %v4247_v8 }
 0x1ec   : > { %v1106_v13 = vpop.f32.mrf.mxu3 }
 0x1ef   : > { %v4249_v16 = vpop.f32.mrf.mxu0 }
 0x1f0   : > { %v4253_v19 = vpop.f32.mrf.mxu2 }
 0x1f1   : > { %v1147_v17 = vpop.f32.mrf.mxu1  ;;  %4832 = vst [vmem:[#allocation29_spill] sm:$0xff] %v4253_v19 }
 0x1f2   : > { %v4251_v18 = vadd.f32 %v1147_v17, %v1047_v12  ;;  %v3171_v12 = vld [vmem:[#allocation2 + $0x28] sm:$0xf]  ;;  %v3370_v17 = vld [vmem:[#allocation2 + $0x38] sm:$0xf0] }
 0x1f3   : > { %v4283_v26 = vor.u32 %v3370_v17, %v3171_v12  ;;  %v1152_v12 = vadd.f32 %v1104_v5, %v4216_v39 }
 0x1f4   : > { %4831 = vst [vmem:[#allocation28_spill] sm:$0xff] %v4251_v18  ;;  %v4255_v20 = vpop.f32.mrf.mxu3  ;;  %v657_v18 = vadd.f32 %v4148_v44, %v4128_v24  ;;  %v4305_v24 = vpop.permute.xlu1 %1509 }
 0x1f5   : > { %4837 = vst [vmem:[#allocation34_spill] sm:$0xff] %v4283_v26  ;;  %1703 = vrot.lane.b32.xlu2 %v4283_v26, %s3705_s15 }
 0x1f6   : > { %v794_v26 = vadd.f32 %v4199_v14, %v657_v18 }
 0x1f7   : > { %v4257_v21 = vpop.f32.mrf.mxu0 }
 0x1f8   : > { %v1217_v28 = vpop.f32.mrf.mxu2 }
 0x1f9   : > { %v4259_v25 = vpop.f32.mrf.mxu1  ;;  %v1265_v54 = vadd.f32 %v1217_v28, %v1152_v12 }
 0x1fa   : > { %4833 = vst [vmem:[#allocation30_spill] sm:$0xff] %v4259_v25 }
 0x1fc   : > { %v4261_v32 = vpop.f32.mrf.mxu3 }
 0x1ff   : > { %v4263_v34 = vpop.f32.mrf.mxu0 }
 0x200   : > { %v1219_v38 = vpop.f32.mrf.mxu2 }
 0x201   : > { %v1330_v37 = vpop.f32.mrf.mxu1 }
 0x204   : > { %v1236_v36 = vpop.f32.mrf.mxu3 }
 0x207   : > { %v4269_v49 = vpop.f32.mrf.mxu0 }
 0x208   : > { %4835 = vst [vmem:[#allocation32_spill] sm:$0xff] %v4269_v49  ;;  %v4271_v55 = vpop.f32.mrf.mxu2  ;;  %v4301_v49 = vpop.permute.xlu2 %1560 }
 0x209   : > { %v1332_v50 = vpop.f32.mrf.mxu1 }
 0x20c   : > { %v1238_v62 = vpop.f32.mrf.mxu3 }
 0x20f   : > { %v4273_v56 = vpop.f32.mrf.mxu0 }
 0x210   : > { %4836 = vst [vmem:[#allocation33_spill] sm:$0xff] %v4273_v56  ;;  %v4277_v2 = vpop.f32.mrf.mxu2  ;;  %v638_v56 = vadd.f32 %v4155_v47, %v4126_v23  ;;  %v913_v23 = vadd.f32 %v4220_v40, %v794_v26  ;;  %v1378_v47 = vadd.f32 %v1330_v37, %v1265_v54 }
 0x211   : > { %v4275_v61 = vpop.f32.mrf.mxu1 }
 0x212   : > { %v793_v59 = vadd.f32 %v4184_v6, %v638_v56  ;;  %v1043_v6 = vadd.f32 %v4225_v43, %v913_v23  ;;  %v4327_v56 = vpop.permute.xlu2 %1514 }
 0x214   : > { %v1241_v17 = vpop.f32.mrf.mxu3  ;;  %v912_v8 = vadd.f32 %v4197_v11, %v793_v59  ;;  %v4314_v11 = vpop.permute.xlu0 %1545  ;;  %v1156_v54 = vadd.f32 %v4245_v7, %v1043_v6 }
 0x215   : > { %v4337_v6 = vpop.permute.xlu1 %1550 }
 0x216   : > { %v1042_v44 = vadd.f32 %v4223_v29, %v912_v8  ;;  %v1269_v18 = vadd.f32 %v1238_v62, %v1156_v54 }
 0x217   : > { %v4289_v25 = vpop.f32.mrf.mxu0 }
 0x218   : > { %4839 = vst [vmem:[#allocation36_spill] sm:$0xff] %v4289_v25  ;;  %v1349_v0 = vpop.f32.mrf.mxu2  ;;  %v1266_v25 = vadd.f32 %v1236_v36, %v1153_v30  ;;  %v4312_v30 = vld [vmem:[%s4795_s8] sm:$0x7]  ;;  %v1155_v59 = vadd.f32 %v1106_v13, %v1042_v44 }
 0x219   : > { %v4291_v19 = vpop.f32.mrf.mxu1  ;;  %v4320_v43 = vperm.slane %v4312_v30, 0  ;;  %v4323_v8 = vperm.slane %v4312_v30, 1 }
 0x21a   : > { %v1379_v46 = vadd.f32 %v1349_v0, %v1266_v25  ;;  %v1268_v0 = vadd.f32 %v1219_v38, %v1155_v59 }
 0x21c   : > { %v1243_v25 = vpop.f32.mrf.mxu3  ;;  %v1381_v37 = vadd.f32 %v1332_v50, %v1268_v0  ;;  %v643_v50 = vadd.f32 %v4179_v63, %v4116_v15 }
 0x21e   : > { %v799_v54 = vadd.f32 %v4204_v22, %v643_v50 }
 0x21f   : > { %v1443_v39 = vpop.f32.mrf.mxu0 }
 0x220   : > { %v1491_v1 = vadd.f32 %v1443_v39, %v1378_v47  ;;  %v1351_v5 = vpop.f32.mrf.mxu2  ;;  %v662_v39 = vadd.f32 %v4172_v58, %v4130_v27 }
 0x221   : > { %v1462_v41 = vpop.f32.mrf.mxu1  ;;  %v1382_v7 = vadd.f32 %v1351_v5, %v1269_v18 }
 0x222   : > { %v1492_v14 = vadd.f32 %v1462_v41, %v1379_v46  ;;  %v1527_v40 = vmul.f32 %v4305_v24, %v1491_v1  ;;  %v1159_v41 = vadd.f32 %v4249_v16, %v4231_v52  ;;  %v1158_v1 = vadd.f32 %v4255_v20, %v4229_v51 }
 0x223   : > { %v800_v27 = vadd.f32 %v4214_v35, %v662_v39  ;;  %v918_v16 = vadd.f32 %v4212_v31, %v799_v54 }
 0x224   : > { %v1528_v29 = vmul.f32 %v4305_v24, %v1492_v14  ;;  %v1563_v28 = vadd.f32 %v4314_v11, %v1527_v40  ;;  %v1271_v58 = vadd.f32 %v4271_v55, %v1158_v1  ;;  %v1272_v15 = vadd.f32 %v1241_v17, %v1159_v41  ;;  %v1368_v40 = vpop.f32.mrf.mxu3 }
 0x225   : > { %v919_v51 = vadd.f32 %v4233_v53, %v800_v27  ;;  %v1048_v35 = vadd.f32 %v4235_v57, %v918_v16 }
 0x226   : > { %v1564_v13 = vadd.f32 %v4314_v11, %v1528_v29  ;;  %v1575_v46 = vmax.f32 %v1563_v28, 0.0  ;;  %v1384_v20 = vadd.f32 %v4275_v61, %v1271_v58 }
 0x227   : > { %v1445_v38 = vpop.f32.mrf.mxu0  ;;  %v1049_v55 = vadd.f32 %v4237_v60, %v919_v51  ;;  %v1161_v61 = vadd.f32 %v4261_v32, %v1048_v35  ;;  %v676_v60 = vadd.f32 %v4150_v45, %v4138_v33  ;;  %v1267_v32 = vadd.f32 %v4263_v34, %v4241_v3 }
 0x228   : > { %v1576_v36 = vmax.f32 %v1564_v13, 0.0  ;;  %v1595_v12 = vmul.f32 %v4320_v43, %v1575_v46  ;;  %v1494_v47 = vadd.f32 %v1445_v38, %v1381_v37  ;;  %v1354_v44 = vpop.f32.mrf.mxu2 }
 0x229   : > { %v1464_v26 = vpop.f32.mrf.mxu1  ;;  %v1385_v29 = vadd.f32 %v1354_v44, %v1272_v15  ;;  %v1162_v53 = vadd.f32 %v4257_v21, %v1049_v55  ;;  %v1274_v38 = vadd.f32 %v4277_v2, %v1161_v61  ;;  %v795_v21 = vadd.f32 %v4195_v10, %v676_v60  ;;  %v4844_v61 = vld [vmem:[#allocation24_spill] sm:$0xff] }
 0x22a   : > { %v1596_v23 = vmul.f32 %v4323_v8, %v1576_v36  ;;  %v1495_v62 = vadd.f32 %v1464_v26, %v1382_v7  ;;  %v1530_v5 = vmul.f32 %v4327_v56, %v1494_v47  ;;  %v1380_v45 = vadd.f32 %v1368_v40, %v1267_v32 }
 0x22b   : > { %v1275_v26 = vadd.f32 %v1243_v25, %v1162_v53  ;;  %v1387_v47 = vadd.f32 %v4291_v19, %v1274_v38  ;;  %v914_v33 = vadd.f32 %v4227_v48, %v795_v21  ;;  %v4841_v48 = vld [vmem:[#allocation27_spill] sm:$0xff]  ;;  %v4845_v38 = vld [vmem:[#allocation25_spill] sm:$0xff]  ;;  %v4848_v21 = vld [vmem:[#allocation26_spill] sm:$0xff] }
 0x22c   : > { %v1620_v14 = vpack.c.bf16 %v1596_v23, %v1595_v12  ;;  %v1531_v59 = vmul.f32 %v4327_v56, %v1495_v62  ;;  %v1566_v63 = vadd.f32 %v4337_v6, %v1530_v5  ;;  %v1370_v50 = vpop.f32.mrf.mxu3 }
 0x22d   : > { %v1044_v3 = vadd.f32 %v4243_v4, %v914_v33  ;;  %v4842_v4 = vld [vmem:[#allocation32_spill] sm:$0xff] }
 0x22e   : > { %1628 = vst [vmem:[#allocation2 + $0x4] sm:$0xff] %v1620_v14  ;;  %v1567_v52 = vadd.f32 %v4337_v6, %v1531_v59  ;;  %v1578_v0 = vmax.f32 %v1566_v63, 0.0  ;;  %v4840_v59 = vld [vmem:[#allocation35_spill] sm:$0xff] }
 0x22f   : > { %v1448_v17 = vpop.f32.mrf.mxu0  ;;  %v1157_v58 = vadd.f32 %v4841_v48, %v1044_v3 }
 0x230   : > { %v1579_v22 = vmax.f32 %v1567_v52, 0.0  ;;  %v1598_v28 = vmul.f32 %v4320_v43, %v1578_v0  ;;  %v1497_v37 = vadd.f32 %v1448_v17, %v1384_v20  ;;  %v1356_v7 = vpop.f32.mrf.mxu2  ;;  %v1591_v0 = vperm.slane %v4312_v30, 2 }
 0x231   : > { %v1467_v18 = vpop.f32.mrf.mxu1  ;;  %v1388_v39 = vadd.f32 %v1356_v7, %v1275_v26  ;;  %v1270_v40 = vadd.f32 %v4842_v4, %v1157_v58  ;;  %v4846_v26 = vld [vmem:[#allocation28_spill] sm:$0xff] }
 0x232   : > { %v1599_v13 = vmul.f32 %v4323_v8, %v1579_v22  ;;  %v1498_v31 = vadd.f32 %v1467_v18, %v1385_v29  ;;  %v1533_v36 = vmul.f32 %v4279_v9, %v1497_v37 }
 0x234   : > { %v1622_v46 = vpack.c.bf16 %v1599_v13, %v1598_v28  ;;  %v1534_v57 = vmul.f32 %v4279_v9, %v1498_v31  ;;  %v1569_v12 = vadd.f32 %v4281_v42, %v1533_v36  ;;  %v1373_v7 = vpop.f32.mrf.mxu3 }
 0x235   : > { %v3364_v63 = vld [vmem:[#allocation2 + $0x4] sm:$0xf] }
 0x236   : > { %1630 = vst [vmem:[#allocation2 + $0x18] sm:$0xff] %v1622_v46  ;;  %v1570_v23 = vadd.f32 %v4281_v42, %v1534_v57  ;;  %v1581_v62 = vmax.f32 %v1569_v12, 0.0  ;;  %v3163_v57 = vld [vmem:[#allocation2 + $0x8] sm:$0xf] }
 0x237   : > { %v1450_v2 = vpop.f32.mrf.mxu0 }
 0x238   : > { %v1582_v44 = vmax.f32 %v1570_v23, 0.0  ;;  %v1601_v41 = vmul.f32 %v4320_v43, %v1581_v62  ;;  %v1500_v14 = vadd.f32 %v1450_v2, %v1387_v47  ;;  %v1481_v5 = vpop.f32.mrf.mxu2  ;;  %v4850_v2 = vld [vmem:[#allocation30_spill] sm:$0xff] }
 0x239   : > { %v1469_v25 = vpop.f32.mrf.mxu1  ;;  %v1493_v34 = vadd.f32 %v1481_v5, %v1380_v45  ;;  %v4851_v5 = vld [vmem:[#allocation36_spill] sm:$0xff] }
 0x23a   : > { %v1602_v1 = vmul.f32 %v4323_v8, %v1582_v44  ;;  %v1501_v10 = vadd.f32 %v1469_v25, %v1388_v39  ;;  %v1536_v54 = vmul.f32 %v4840_v59, %v1500_v14  ;;  %v4849_v44 = vld [vmem:[#allocation29_spill] sm:$0xff] }
 0x23b   : > { %v1529_v15 = vmul.f32 %v4305_v24, %v1493_v34  ;;  %v1383_v24 = vadd.f32 %v1370_v50, %v1270_v40 }
 0x23c   : > { %v1624_v19 = vpack.c.bf16 %v1602_v1, %v1601_v41  ;;  %v1537_v27 = vmul.f32 %v4840_v59, %v1501_v10  ;;  %v1572_v16 = vadd.f32 %v4301_v49, %v1536_v54 }
 0x23d   : > { %v3157_v52 = vld [vmem:[#allocation2 + $0x14] sm:$0xf0]  ;;  %v1565_v29 = vadd.f32 %v4314_v11, %v1529_v15  ;;  %v3367_v31 = vld [vmem:[#allocation2 + $0x18] sm:$0xf0]  ;;  %v4843_v11 = vld [vmem:[#allocation23_spill] sm:$0xff] }
 0x23e   : > { %1632 = vst [vmem:[#allocation2 + $0x2c] sm:$0xff] %v1624_v19  ;;  %v1573_v51 = vadd.f32 %v4301_v49, %v1537_v27  ;;  %v4378_v20 = vor.u32 %v3364_v63, %v3157_v52  ;;  %v1584_v22 = vmax.f32 %v1572_v16, 0.0  ;;  %v681_v30 = vadd.f32 %v4844_v61, %v4843_v11 }
 0x23f   : > { %v1577_v55 = vmax.f32 %v1565_v29, 0.0  ;;  %v4390_v60 = vor.u32 %v3367_v31, %v3163_v57 }
 0x240   : > { %v1585_v35 = vmax.f32 %v1573_v51, 0.0  ;;  %1697 = vrot.lane.b32.xlu2 %v4378_v20, %s3705_s15  ;;  %v1604_v17 = vmul.f32 %v4320_v43, %v1584_v22  ;;  %v1483_v28 = vpop.f32.mrf.mxu2  ;;  %v801_v43 = vadd.f32 %v4845_v38, %v681_v30 }
 0x241   : > { %v1597_v13 = vmul.f32 %v1591_v0, %v1577_v55  ;;  %v1496_v37 = vadd.f32 %v1483_v28, %v1383_v24 }
 0x242   : > { %v1605_v18 = vmul.f32 %v4323_v8, %v1585_v35  ;;  %v4847_v8 = vld [vmem:[#allocation33_spill] sm:$0xff]  ;;  %v920_v32 = vadd.f32 %v4848_v21, %v801_v43 }
 0x243   : > { %v1621_v46 = vpack.c.bf16 %v1597_v13, %v1597_v13  ;;  %v1532_v36 = vmul.f32 %v4327_v56, %v1496_v37  ;;  %v1273_v12 = vadd.f32 %v4847_v8, %v4846_v26  ;;  %v3245_v13 = vld [vmem:[#allocation2 + $0x18] sm:$0xf0]  ;;  %v3380_v37 = vld [vmem:[#allocation2 + $0x8] sm:$0xf]  ;;  %v3381_v26 = vld [vmem:[#allocation2 + $0x14] sm:$0xf0] }
 0x244   : > { %v1626_v53 = vpack.c.bf16 %v1605_v18, %v1604_v17  ;;  %v1050_v39 = vadd.f32 %v4849_v44, %v920_v32  ;;  %v4853_v17 = vld [vmem:[#allocation31_spill] sm:$0xff]  ;;  %v4447_v31 = vor.u32 %v3380_v37, %v3245_v13  ;;  %v3243_v8 = vld [vmem:[#allocation2 + $0x4] sm:$0xf] }
 0x245   : > { %1629 = vst.msk [vmem:[#allocation2 + $0xc] sm:$0xf] %vm1609_vm9, %v1621_v46  ;;  %v1568_v23 = vadd.f32 %v4337_v6, %v1532_v36  ;;  %v1386_v47 = vadd.f32 %v1373_v7, %v1273_v12  ;;  %v3368_v1 = vld [vmem:[#allocation2 + $0x2c] sm:$0xf]  ;;  %v1375_v6 = vpop.f32.mrf.mxu3  ;;  %v3179_v52 = vld [vmem:[#allocation2 + $0x30] sm:$0xf]  ;;  %v4476_v12 = vor.u32 %v3381_v26, %v3243_v8 }
 0x246   : > { %1634 = vst [vmem:[#allocation2 + $0x40] sm:$0xff] %v1626_v53  ;;  %v1163_v25 = vadd.f32 %v4850_v2, %v1050_v39  ;;  %v3383_v18 = vld [vmem:[#allocation2 + $0x30] sm:$0xf]  ;;  %v3255_v38 = vld [vmem:[#allocation2 + $0x2c] sm:$0xf] }
 0x247   : > { %v1580_v56 = vmax.f32 %v1568_v23, 0.0  ;;  %v2739_v37 = vld [vmem:[%s4794_s7 + $0x10] sm:$0xff] }
 0x248   : > { %1699 = vrot.lane.b32.xlu2 %v4390_v60, %s3705_s15  ;;  %v1486_v62 = vpop.f32.mrf.mxu2  ;;  %v1276_v3 = vadd.f32 %v4851_v5, %v1163_v25 }
 0x249   : > { %v1600_v33 = vmul.f32 %v1591_v0, %v1580_v56  ;;  %v1499_v45 = vadd.f32 %v1486_v62, %v1386_v47  ;;  %v3372_v62 = vld [vmem:[#allocation9 + $0x10] sm:$0xff] }
 0x24a   : > { %v1389_v19 = vadd.f32 %v1375_v6, %v1276_v3 }
 0x24b   : > { %v1623_v50 = vpack.c.bf16 %v1600_v33, %v1600_v33  ;;  %v1535_v41 = vmul.f32 %v4279_v9, %v1499_v45  ;;  %v2702_v45 = vld [vmem:[%s4793_s6 + $0x8] sm:$0xff] }
 0x24c   : > { %v3365_v22 = vld [vmem:[#allocation2 + $0xc] sm:$0xf] }
 0x24d   : > { %v3173_v14 = vld [vmem:[#allocation2 + $0x3c] sm:$0xf0]  ;;  %1631 = vst.msk [vmem:[#allocation2 + $0x20] sm:$0xf] %vm1609_vm9, %v1623_v50  ;;  %v1571_v34 = vadd.f32 %v4281_v42, %v1535_v41  ;;  %v3371_v9 = vld [vmem:[#allocation2 + $0x40] sm:$0xf0] }
 0x24e   : > { %v3176_v10 = vor.u32 %v3368_v1, %v3173_v14  ;;  %v3180_v16 = vor.u32 %v3371_v9, %v3179_v52  ;;  %v3384_v46 = vld [vmem:[#allocation2 + $0x3c] sm:$0xf0]  ;;  %v3251_v36 = vld [vmem:[#allocation2 + $0xc] sm:$0xf]  ;;  %v1696_v47 = vpop.permute.xlu1 %1695  ;;  %v3373_v1 = vld [vmem:[#allocation9 + $0x18] sm:$0xff] }
 0x24f   : > { %v1583_v54 = vmax.f32 %v1571_v34, 0.0  ;;  %v1704_v7 = vpop.permute.xlu2 %1703  ;;  %v4468_v43 = vor.u32 %v3384_v46, %v3255_v38  ;;  %v2737_v41 = vld [vmem:[%s4794_s7] sm:$0xff]  ;;  %v2740_v34 = vld [vmem:[%s4794_s7 + $0x18] sm:$0xff]  ;;  %v2703_v9 = vld [vmem:[%s4793_s6 + $0x10] sm:$0xff] }
 0x250   : > { %1705 = vrot.lane.b32.xlu0 %v3176_v10, %s3705_s15  ;;  %1806 = vrot.lane.b32.xlu2 %v3176_v10, %s3706_s24  ;;  %v1488_v27 = vpop.f32.mrf.mxu2 }
 0x251   : > { %v1603_v48 = vmul.f32 %v1591_v0, %v1583_v54  ;;  %v1502_v58 = vadd.f32 %v1488_v27, %v1389_v19 }
 0x253   : > { %v1625_v15 = vpack.c.bf16 %v1603_v48, %v1603_v48  ;;  %v1538_v63 = vmul.f32 %v4840_v59, %v1502_v58  ;;  %v4852_v59 = vld [vmem:[#allocation34_spill] sm:$0xff] }
 0x254   : > { %v3165_v40 = vld [vmem:[#allocation2 + $0x1c] sm:$0xf0] }
 0x255   : > { %1633 = vst.msk [vmem:[#allocation2 + $0x34] sm:$0xf] %vm1609_vm9, %v1625_v15  ;;  %v1574_v51 = vadd.f32 %v4301_v49, %v1538_v63  ;;  %v3168_v35 = vor.u32 %v3365_v22, %v3165_v40  ;;  %v3382_v30 = vld [vmem:[#allocation2 + $0x1c] sm:$0xf0] }
 0x256   : > { %v4466_v57 = vor.u32 %v3382_v30, %v3251_v36  ;;  %v3362_v63 = vld [vmem:[#allocation9] sm:$0xff] }
 0x257   : > { %v1586_v42 = vmax.f32 %v1574_v51, 0.0  ;;  %v2701_v40 = vld [vmem:[%s4793_s6] sm:$0xff] }
 0x258   : > { %1707 = vrot.lane.b32.xlu0 %v3180_v16, %s3705_s15  ;;  %1798 = vrot.lane.b32.xlu2 %v4378_v20, %s3706_s24 }
 0x259   : > { %v1606_v4 = vmul.f32 %v1591_v0, %v1586_v42  ;;  %v3257_v0 = vld [vmem:[#allocation2 + $0x40] sm:$0xf0] }
 0x25a   : > { %v4441_v28 = vor.u32 %v3383_v18, %v3257_v0 }
 0x25b   : > { %v1627_v29 = vpack.c.bf16 %v1606_v4, %v1606_v4  ;;  %v2738_v4 = vld [vmem:[%s4794_s7 + $0x8] sm:$0xff] }
 0x25c   : > { %v3369_v24 = vld [vmem:[#allocation2 + $0x34] sm:$0xf] }
 0x25d   : > { %1635 = vst.msk [vmem:[#allocation2 + $0x48] sm:$0xf] %vm1609_vm9, %v1627_v29  ;;  %v3263_v11 = vld [vmem:[#allocation2 + $0x34] sm:$0xf] }
 0x260   : > { %1701 = vrot.lane.b32.xlu0 %v3168_v35, %s3705_s15  ;;  %1910 = vrot.lane.b32.xlu2 %v4852_v59, %s3707_s19 }
 0x264   : > { %v3181_v49 = vld [vmem:[#allocation2 + $0x44] sm:$0xf0] }
 0x265   : > { %v3184_v55 = vor.u32 %v3369_v24, %v3181_v49  ;;  %v3385_v53 = vld [vmem:[#allocation2 + $0x44] sm:$0xf0]  ;;  %v2704_v49 = vld [vmem:[%s4793_s6 + $0x18] sm:$0xff] }
 0x266   : > { %v4458_v61 = vor.u32 %v3385_v53, %v3263_v11 }
 0x267   : > { %1709 = vrot.lane.b32.xlu1 %v3184_v55, %s3705_s15 }
 0x268   : > { %1808 = vrot.lane.b32.xlu0 %v3180_v16, %s3706_s24  ;;  %1902 = vrot.lane.b32.xlu2 %v4853_v17, %s3707_s19 }
 0x26f   : > { %1804 = vrot.lane.b32.xlu1 %v4852_v59, %s3706_s24 }
 0x270   : > { %1800 = vrot.lane.b32.xlu0 %v4390_v60, %s3706_s24  ;;  %1916 = vrot.lane.b32.xlu2 %v3184_v55, %s3707_s19 }
 0x277   : > { %1796 = vrot.lane.b32.xlu1 %v4853_v17, %s3706_s24 }
 0x278   : > { %1912 = vrot.lane.b32.xlu0 %v3176_v10, %s3707_s19  ;;  %2028 = vrot.lane.b32.xlu2 %v4852_v59, %s3708_s11 }
 0x27f   : > { %1810 = vrot.lane.b32.xlu1 %v3184_v55, %s3706_s24 }
 0x280   : > { %1904 = vrot.lane.b32.xlu0 %v4378_v20, %s3707_s19  ;;  %2020 = vrot.lane.b32.xlu2 %v4853_v17, %s3708_s11 }
 0x287   : > { %1802 = vrot.lane.b32.xlu1 %v3168_v35, %s3706_s24  ;;  %s2834_s24 = scalar_lea.hbm %s4796_s9, %s3404_s25 }
 0x288   : > { %1906 = vrot.lane.b32.xlu0 %v4390_v60, %s3707_s19  ;;  %2034 = vrot.lane.b32.xlu2 %v3184_v55, %s3708_s11  ;;  %v3363_v55 = vld [vmem:[#allocation9 + $0x8] sm:$0xff] }
 0x28f   : > { %1914 = vrot.lane.b32.xlu1 %v3180_v16, %s3707_s19 }
 0x290   : > { %2030 = vrot.lane.b32.xlu0 %v3176_v10, %s3708_s11  ;;  %2276 = vrot.lane.b32.xlu2 %v4441_v28, %s3709_s23 }
 0x297   : > { %1908 = vrot.lane.b32.xlu1 %v3168_v35, %s3707_s19  ;;  %s2835_s19 = sshll.u32 %s4695_s29, 4  ;;  %s2836_s19 = int_to_ptr.vmem [resolvable:$true] %s2835_s19 }
 0x298   : > { %2022 = vrot.lane.b32.xlu0 %v4378_v20, %s3708_s11  ;;  %2270 = vrot.lane.b32.xlu2 %v4447_v31, %s3709_s23 }
 0x29a   : > { %v1698_v20 = vpop.permute.xlu2 %1697 }
 0x29b   : > { %v1711_v56 = vsel %vm504_vm0, %v1696_v47, %v1698_v20 }
 0x29f   : > { %2032 = vrot.lane.b32.xlu1 %v3180_v16, %s3708_s11 }
 0x2a0   : > { %2026 = vrot.lane.b32.xlu0 %v3168_v35, %s3708_s11  ;;  %2388 = vrot.lane.b32.xlu2 %v4441_v28, %s3710_s28 }
 0x2a7   : > { %2024 = vrot.lane.b32.xlu1 %v4390_v60, %s3708_s11  ;;  %v1700_v60 = vpop.permute.xlu2 %1699  ;;  %s2837_s11 = sshll.u32 %s2834_s24, 4  ;;  %s2838_s11 = int_to_ptr.hbm [resolvable:$true] %s2837_s11 }
 0x2a8   : > { %2278 = vrot.lane.b32.xlu0 %v4458_v61, %s3709_s23  ;;  %2390 = vrot.lane.b32.xlu2 %v4458_v61, %s3710_s28  ;;  %v1712_v2 = vsel %vm504_vm0, %v1698_v20, %v1700_v60 }
 0x2af   : > { %2274 = vrot.lane.b32.xlu1 %v4468_v43, %s3709_s23  ;;  %v1807_v23 = vpop.permute.xlu2 %1806 }
 0x2b0   : > { %2272 = vrot.lane.b32.xlu0 %v4466_v57, %s3709_s23  ;;  %2500 = vrot.lane.b32.xlu2 %v4441_v28, %s3711_s5 }
 0x2b7   : > { %2268 = vrot.lane.b32.xlu1 %v4476_v12, %s3709_s23  ;;  %v1799_v44 = vpop.permute.xlu2 %1798  ;;  %s2823_s23 = scalar_lea.sflag [#allocation5], %s3886_s21 }
 0x2b8   : > { %2380 = vrot.lane.b32.xlu0 %v4476_v12, %s3710_s28  ;;  %2494 = vrot.lane.b32.xlu2 %v4447_v31, %s3711_s5 }
 0x2bf   : > { %2386 = vrot.lane.b32.xlu1 %v4468_v43, %s3710_s28  ;;  %v1911_v50 = vpop.permute.xlu2 %1910 }
 0x2c0   : > { %2384 = vrot.lane.b32.xlu0 %v4466_v57, %s3710_s28  ;;  %2612 = vrot.lane.b32.xlu2 %v4441_v28, %s3712_s14 }
 0x2c2   : > { %v1706_v21 = vpop.permute.xlu0 %1705 }
 0x2c3   : > { %v1714_v32 = vsel %vm504_vm0, %v1704_v7, %v1706_v21  ;;  %v3374_v7 = vld [vmem:[#allocation9 + $0x20] sm:$0xff] }
 0x2c4   : > { %1735 = vmatpush.bf16.msrb.mxu3 %v1714_v32  ;;  %v3375_v32 = vld [vmem:[#allocation9 + $0x28] sm:$0xff] }
 0x2c7   : > { %2382 = vrot.lane.b32.xlu1 %v4447_v31, %s3710_s28  ;;  %v1903_v3 = vpop.permute.xlu2 %1902  ;;  %s3631_s28 = sshra.s32 %s2838_s11, 4  ;;  %s3632_s28 = int_to_ptr.hbm [resolvable:$true] %s3631_s28 }
 0x2c8   : > { %2502 = vrot.lane.b32.xlu0 %v4458_v61, %s3711_s5  ;;  %2614 = vrot.lane.b32.xlu2 %v4458_v61, %s3712_s14  ;;  %p3638_p9 = scmp.lt.s32.totalorder %s3632_s28, %s4796_s9 }
 0x2c9   : > { %1736 = vmatpush.bf16.msrb.mxu3 %v1711_v56 }
 0x2ca   : > { %v1708_v39 = vpop.permute.xlu0 %1707 }
 0x2cb   : > { %v1715_v33 = vsel %vm504_vm0, %v1706_v21, %v1708_v39 }
 0x2cc   : > { %1754 = vmatpush.bf16.msrb.mxu0 %v1715_v33  ;;  %3185 = vmatmul.msk.bf16.vlgmr.msrb.gmra.mxu3 %vm517_vm1, %v3372_v62 }
 0x2cf   : > { %2498 = vrot.lane.b32.xlu1 %v4468_v43, %s3711_s5  ;;  %v1917_v15 = vpop.permute.xlu2 %1916 }
 0x2d0   : > { %2496 = vrot.lane.b32.xlu0 %v4466_v57, %s3711_s5  ;;  %2712 = vperm.xlu2 %3494, %v2702_v45  }
 0x2d1   : > { %1755 = vmatpush.bf16.msrb.mxu0 %v1712_v2 }
 0x2d2   : > { %v1702_v25 = vpop.permute.xlu0 %1701 }
 0x2d3   : > { %v1713_v19 = vsel %vm504_vm0, %v1700_v60, %v1702_v25 }
 0x2d4   : > { %3187 = vmatmul.msk.bf16.vlgmr.msrb.gmra.mxu0 %vm517_vm1, %v3372_v62 }
 0x2d7   : > { %2492 = vrot.lane.b32.xlu1 %v4476_v12, %s3711_s5  ;;  %v2029_v29 = vpop.permute.xlu2 %2028  ;;  %s3633_s5 = scalar_lea.hbm %s3632_s28, 96 }
 0x2d8   : > { %2604 = vrot.lane.b32.xlu0 %v4476_v12, %s3712_s14  ;;  %2743 = vperm.xlu2 %3494, %v2737_v41   ;;  %p3634_p1 = scmp.ne.s32.totalorder %s3632_s28, %s3633_s5  ;;  %p3639_p10 = scmp.lt.s32.totalorder %s3637_s26, %s3633_s5 }
 0x2d9   : > { %v1710_v10 = vpop.permute.xlu1 %1709 }
 0x2da   : > { %v1809_v14 = vpop.permute.xlu0 %1808  ;;  %v1716_v5 = vsel %vm504_vm0, %v1708_v39, %v1710_v10  ;;  %v3377_v10 = vld [vmem:[#allocation9 + $0x38] sm:$0xff]  ;;  %p3635_p4 = pnand %p3634_p1, %p3832_p3  ;;  %p3640_p11 = por %p3639_p10, %p3638_p9 }
 0x2db   : > { %v1816_v6 = vsel %vm607_vm2, %v1807_v23, %v1809_v14  ;;  %1773 = vmatpush.bf16.msrb.mxu1 %v1716_v5 }
 0x2dc   : > { %1855 = vmatpush.bf16.msra.mxu3 %v1816_v6  ;;  %p3636_p8 = pneg %p3635_p4 }
 0x2dd   : > { %3186 = vmatmul.msk.bf16.gmra.mxu3 %vm517_vm1, %v3373_v1 }
 0x2de   : > { %p3641_p2 = pnand %p3640_p11, %p3636_p8 }
 0x2df   : > { %2610 = vrot.lane.b32.xlu1 %v4468_v43, %s3712_s14  ;;  %1774 = vmatpush.bf16.msrb.mxu1 %v1713_v19  ;;  %v2021_v0 = vpop.permute.xlu2 %2020 }
 0x2e0   : > { %2608 = vrot.lane.b32.xlu0 %v4466_v57, %s3712_s14  ;;  %2758 = vperm.xlu2 %3494, %v2740_v34  }
 0x2e1   : > { %v1805_v27 = vpop.permute.xlu1 %1804 }
 0x2e2   : > { %v1801_v54 = vpop.permute.xlu0 %1800  ;;  %v1815_v58 = vsel %vm607_vm2, %v1805_v27, %v1807_v23  ;;  %3189 = vmatmul.msk.bf16.vlgmr.msrb.gmra.mxu1 %vm517_vm1, %v3372_v62 }
 0x2e3   : > { %v1813_v48 = vsel %vm607_vm2, %v1799_v44, %v1801_v54  ;;  %1836 = vmatpush.bf16.msra.mxu2 %v1815_v58 }
 0x2e4   : > { %1856 = vmatpush.bf16.msra.mxu3 %v1813_v48  ;;  %3188 = vmatmul.msk.bf16.gmra.mxu0 %vm517_vm1, %v3373_v1 }
 0x2e7   : > { %2606 = vrot.lane.b32.xlu1 %v4447_v31, %s3712_s14  ;;  %v2035_v36 = vpop.permute.xlu2 %2034 }
 0x2e8   : > { %2717 = vperm.xlu0 %3495, %v2703_v9  }
 0x2e9   : > { %v1797_v51 = vpop.permute.xlu1 %1796 }
 0x2ea   : > { %v1913_v52 = vpop.permute.xlu0 %1912  ;;  %v1812_v42 = vsel %vm607_vm2, %v1797_v51, %v1799_v44 }
 0x2eb   : > { %v1921_v16 = vsel %vm714_vm3, %v1911_v50, %v1913_v52  ;;  %1837 = vmatpush.bf16.msra.mxu2 %v1812_v42 }
 0x2ec   : > { %1942 = vmatpush.bf16.msra.mxu1 %v1921_v16 }
 0x2ed   : > { %3201 = vmatmul.msk.bf16.vlgmr.msra.gmra.mxu3 %vm517_vm1, %v3362_v63 }
 0x2ee   : > { %3199 = vmatmul.msk.bf16.vlgmr.msra.gmra.mxu2 %vm517_vm1, %v3362_v63 }
 0x2ef   : > { %2707 = vperm.xlu1 %3496, %v2701_v40   ;;  %v2277_v21 = vpop.permute.xlu2 %2276 }
 0x2f0   : > { %2748 = vperm.xlu0 %3495, %v2738_v4  }
 0x2f1   : > { %v1811_v35 = vpop.permute.xlu1 %1810 }
 0x2f2   : > { %v1905_v22 = vpop.permute.xlu0 %1904  ;;  %v1817_v24 = vsel %vm607_vm2, %v1809_v14, %v1811_v35  ;;  %3190 = vmatmul.msk.bf16.gmra.mxu1 %vm517_vm1, %v3373_v1  ;;  %v3386_v35 = vld [vmem:[#allocation9 + $0x50] sm:$0xff] }
 0x2f3   : > { %v1918_v59 = vsel %vm714_vm3, %v1903_v3, %v1905_v22  ;;  %1874 = vmatpush.bf16.msra.mxu0 %v1817_v24  ;;  %v3378_v3 = vld [vmem:[#allocation9 + $0x40] sm:$0xff] }
 0x2f4   : > { %1943 = vmatpush.bf16.msra.mxu1 %v1918_v59 }
 0x2f7   : > { %2722 = vperm.xlu1 %3496, %v2704_v49  }
 0x2f9   : > { %v1803_v18 = vpop.permute.xlu1 %1802 }
 0x2fa   : > { %v1907_v17 = vpop.permute.xlu0 %1906  ;;  %v1814_v13 = vsel %vm607_vm2, %v1801_v54, %v1803_v18 }
 0x2fb   : > { %1875 = vmatpush.bf16.msra.mxu0 %v1814_v13  ;;  %v1919_v38 = vsel %vm714_vm3, %v1905_v22, %v1907_v17 }
 0x2fd   : > { %3202 = vmatmul.msk.bf16.gmra.mxu3 %vm517_vm1, %v3363_v55 }
 0x2fe   : > { %3200 = vmatmul.msk.bf16.gmra.mxu2 %vm517_vm1, %v3363_v55  ;;  %3203 = vmatmul.msk.bf16.vlgmr.msra.gmra.mxu0 %vm517_vm1, %v3362_v63 }
 0x2ff   : > { %2753 = vperm.xlu1 %3496, %v2739_v37  }
 0x301   : > { %v1915_v20 = vpop.permute.xlu1 %1914 }
 0x302   : > { %v2031_v53 = vpop.permute.xlu0 %2030  ;;  %v1922_v30 = vsel %vm714_vm3, %v1913_v52, %v1915_v20  ;;  %v1923_v46 = vsel %vm714_vm3, %v1915_v20, %v1917_v15  ;;  %3213 = vmatmul.msk.bf16.vlgmr.msra.gmra.mxu1 %vm517_vm1, %v3374_v7  ;;  %v3379_v15 = vld [vmem:[#allocation9 + $0x48] sm:$0xff] }
 0x303   : > { %v2039_v11 = vsel %vm833_vm4, %v2029_v29, %v2031_v53  ;;  %1961 = vmatpush.bf16.msrb.mxu2 %v1922_v30  ;;  %1980 = vmatpush.bf16.msrb.mxu3 %v1923_v46  ;;  %v3388_v46 = vld [vmem:[#allocation9 + $0x60] sm:$0xff] }
 0x304   : > { %2060 = vmatpush.bf16.msrb.mxu0 %v2039_v11 }
 0x307   : > { %1962 = vmatpush.bf16.msrb.mxu2 %v1919_v38 }
 0x309   : > { %v1909_v60 = vpop.permute.xlu1 %1908 }
 0x30a   : > { %v2023_v26 = vpop.permute.xlu0 %2022  ;;  %v1920_v23 = vsel %vm714_vm3, %v1907_v17, %v1909_v60 }
 0x30b   : > { %v2036_v8 = vsel %vm833_vm4, %v2021_v0, %v2023_v26  ;;  %1981 = vmatpush.bf16.msrb.mxu3 %v1920_v23 }
 0x30c   : > { %2061 = vmatpush.bf16.msrb.mxu0 %v2036_v8 }
 0x30e   : > { %3204 = vmatmul.msk.bf16.gmra.mxu0 %vm517_vm1, %v3363_v55  ;;  %3215 = vmatmul.msk.bf16.vlgmr.msrb.gmra.mxu2 %vm517_vm1, %v3374_v7 }
 0x30f   : > { %2190 = vmatpush.bf16.msra.mxu3 %v4468_v43  ;;  %v2271_v43 = vpop.permute.xlu2 %2270 }
 0x310   : > { %2209 = vmatpush.bf16.msra.mxu0 %v4441_v28  ;;  %3217 = vmatmul.msk.bf16.vlgmr.msrb.gmra.mxu3 %vm517_vm1, %v3374_v7  ;;  %v3387_v7 = vld [vmem:[#allocation9 + $0x58] sm:$0xff] }
 0x311   : > { %v2033_v56 = vpop.permute.xlu1 %2032 }
 0x312   : > { %v2027_v47 = vpop.permute.xlu0 %2026  ;;  %v2040_v62 = vsel %vm833_vm4, %v2031_v53, %v2033_v56  ;;  %v2041_v28 = vsel %vm833_vm4, %v2033_v56, %v2035_v36  ;;  %3214 = vmatmul.msk.bf16.gmra.mxu1 %vm517_vm1, %v3375_v32 }
 0x313   : > { %2191 = vmatpush.bf16.msra.mxu3 %v4476_v12  ;;  %2098 = vmatpush.bf16.msra.mxu2 %v2041_v28  ;;  %v3376_v12 = vld [vmem:[#allocation9 + $0x30] sm:$0xff] }
 0x314   : > { %2210 = vmatpush.bf16.msra.mxu0 %v4447_v31  ;;  %2079 = vmatpush.bf16.msrb.mxu1 %v2040_v62 }
 0x317   : > { %v2389_v25 = vpop.permute.xlu2 %2388 }
 0x319   : > { %v2025_v33 = vpop.permute.xlu1 %2024 }
 0x31a   : > { %v2279_v44 = vpop.permute.xlu0 %2278  ;;  %v2037_v31 = vsel %vm833_vm4, %v2023_v26, %v2025_v33  ;;  %v2038_v45 = vsel %vm833_vm4, %v2025_v33, %v2027_v47  ;;  %v3389_v47 = vld [vmem:[#allocation9 + $0x68] sm:$0xff] }
 0x31b   : > { %v2283_v39 = vsel %vm1078_vm5, %v2277_v21, %v2279_v44  ;;  %2080 = vmatpush.bf16.msrb.mxu1 %v2037_v31  ;;  %2099 = vmatpush.bf16.msra.mxu2 %v2038_v45 }
 0x31c   : > { %2321 = vmatpush.bf16.msrb.mxu3 %v2283_v39 }
 0x31e   : > { %3216 = vmatmul.msk.bf16.gmra.mxu2 %vm517_vm1, %v3375_v32  ;;  %3227 = vmatmul.msk.bf16.vlgmr.msrb.gmra.mxu0 %vm517_vm1, %v3376_v12 }
 0x31f   : > { %2228 = vmatpush.bf16.msra.mxu1 %v4458_v61  ;;  %2340 = vmatpush.bf16.msrb.mxu0 %v2279_v44  ;;  %v2391_v5 = vpop.permute.xlu2 %2390 }
 0x320   : > { %3218 = vmatmul.msk.bf16.gmra.mxu3 %vm517_vm1, %v3375_v32 }
 0x321   : > { %v2275_v50 = vpop.permute.xlu1 %2274 }
 0x322   : > { %v2273_v2 = vpop.permute.xlu0 %2272  ;;  %v2282_v1 = vsel %vm1078_vm5, %v2275_v50, %v2277_v21  ;;  %3229 = vmatmul.msk.bf16.vlgmr.msrb.gmra.mxu1 %vm517_vm1, %v3376_v12 }
 0x323   : > { %2229 = vmatpush.bf16.msra.mxu1 %v4466_v57  ;;  %v2281_v41 = vsel %vm1078_vm5, %v2271_v43, %v2273_v2  ;;  %2341 = vmatpush.bf16.msrb.mxu0 %v2273_v2  ;;  %v2395_v57 = vsel %vm1191_vm6, %v2389_v25, %v2391_v5 }
 0x324   : > { %2322 = vmatpush.bf16.msrb.mxu3 %v2281_v41  ;;  %2302 = vmatpush.bf16.msrb.mxu2 %v2282_v1 }
 0x327   : > { %v2501_v63 = vpop.permute.xlu2 %2500 }
 0x329   : > { %v2269_v14 = vpop.permute.xlu1 %2268 }
 0x32a   : > { %v2381_v61 = vpop.permute.xlu0 %2380  ;;  %v2280_v6 = vsel %vm1078_vm5, %v2269_v14, %v2271_v43 }
 0x32b   : > { %2303 = vmatpush.bf16.msrb.mxu2 %v2280_v6 }
 0x32e   : > { %3228 = vmatmul.msk.bf16.gmra.mxu0 %vm517_vm1, %v3377_v10  ;;  %3231 = vmatmul.msk.bf16.vlgmr.msra.gmra.mxu2 %vm517_vm1, %v3376_v12  ;;  %v3390_v12 = vld [vmem:[#allocation9 + $0x70] sm:$0xff] }
 0x32f   : > { %2433 = vmatpush.bf16.msra.mxu2 %v2395_v57  ;;  %v2495_v4 = vpop.permute.xlu2 %2494 }
 0x330   : > { %3265 = vmatmul.msk.bf16.vlgmr.msra.gmra.mxu3 %vm517_vm1, %v3378_v3 }
 0x331   : > { %2452 = vmatpush.bf16.msra.mxu3 %v2391_v5  ;;  %v2387_v19 = vpop.permute.xlu1 %2386 }
 0x332   : > { %v2385_v34 = vpop.permute.xlu0 %2384  ;;  %v2394_v54 = vsel %vm1191_vm6, %v2387_v19, %v2389_v25  ;;  %3230 = vmatmul.msk.bf16.gmra.mxu1 %vm517_vm1, %v3377_v10 }
 0x333   : > { %2414 = vmatpush.bf16.msrb.mxu1 %v2394_v54 }
 0x335   : > { %2453 = vmatpush.bf16.msra.mxu3 %v2385_v34 }
 0x337   : > { %v2613_v24 = vpop.permute.xlu2 %2612 }
 0x339   : > { %v2383_v27 = vpop.permute.xlu1 %2382 }
 0x33a   : > { %v2503_v48 = vpop.permute.xlu0 %2502  ;;  %v2392_v58 = vsel %vm1191_vm6, %v2381_v61, %v2383_v27  ;;  %v2393_v9 = vsel %vm1191_vm6, %v2383_v27, %v2385_v34 }
 0x33b   : > { %2415 = vmatpush.bf16.msrb.mxu1 %v2392_v58  ;;  %2434 = vmatpush.bf16.msra.mxu2 %v2393_v9  ;;  %v2507_v51 = vsel %vm1304_vm7, %v2501_v63, %v2503_v48  ;;  %v3392_v9 = vld [vmem:[#allocation9 + $0x80] sm:$0xff] }
 0x33e   : > { %3232 = vmatmul.msk.bf16.gmra.mxu2 %vm517_vm1, %v3377_v10  ;;  %3267 = vmatmul.msk.bf16.vlgmr.msra.gmra.mxu0 %vm517_vm1, %v3378_v3 }
 0x33f   : > { %v2615_v53 = vpop.permute.xlu2 %2614 }
 0x340   : > { %3266 = vmatmul.msk.bf16.gmra.mxu3 %vm517_vm1, %v3379_v15  ;;  %v2619_v11 = vsel %vm1417_vm8, %v2613_v24, %v2615_v53 }
 0x341   : > { %v2499_v52 = vpop.permute.xlu1 %2498 }
 0x342   : > { %v2506_v16 = vsel %vm1304_vm7, %v2499_v52, %v2501_v63  ;;  %3269 = vmatmul.msk.bf16.vlgmr.msra.gmra.mxu1 %vm517_vm1, %v3378_v3  ;;  %v2497_v42 = vpop.permute.xlu0 %2496 }
 0x343   : > { %2526 = vmatpush.bf16.msra.mxu0 %v2506_v16  ;;  %2545 = vmatpush.bf16.msra.mxu1 %v2507_v51  ;;  %v2505_v40 = vsel %vm1304_vm7, %v2495_v4, %v2497_v42 }
 0x347   : > { %2546 = vmatpush.bf16.msra.mxu1 %v2505_v40 }
 0x349   : > { %v2493_v29 = vpop.permute.xlu1 %2492 }
 0x34a   : > { %v2504_v22 = vsel %vm1304_vm7, %v2493_v29, %v2495_v4  ;;  %v2605_v18 = vpop.permute.xlu0 %2604 }
 0x34b   : > { %2527 = vmatpush.bf16.msra.mxu0 %v2504_v22 }
 0x34e   : > { %3268 = vmatmul.msk.bf16.gmra.mxu0 %vm517_vm1, %v3379_v15  ;;  %3279 = vmatmul.msk.bf16.vlgmr.msrb.gmra.mxu2 %vm517_vm1, %v3386_v35 }
 0x34f   : > { %v1738_v59 = vpop.f32.mrf.mxu3  ;;  %2564 = vmatpush.bf16.msrb.mxu2 %v2503_v48  ;;  %v3391_v48 = vld [vmem:[#allocation9 + $0x78] sm:$0xff] }
 0x350   : > { %3281 = vmatmul.msk.bf16.vlgmr.msrb.gmra.mxu3 %vm517_vm1, %v3386_v35 }
 0x351   : > { %v2611_v49 = vpop.permute.xlu1 %2610  ;;  %v1757_v0 = vpop.f32.mrf.mxu0 }
 0x352   : > { %v2618_v55 = vsel %vm1417_vm8, %v2611_v49, %v2613_v24  ;;  %3270 = vmatmul.msk.bf16.gmra.mxu1 %vm517_vm1, %v3379_v15  ;;  %v2609_v38 = vpop.permute.xlu0 %2608 }
 0x353   : > { %2565 = vmatpush.bf16.msrb.mxu2 %v2497_v42  ;;  %2638 = vmatpush.bf16.msrb.mxu3 %v2618_v55 }
 0x357   : > { %v1740_v17 = vpop.f32.mrf.mxu3 }
 0x359   : > { %v2607_v13 = vpop.permute.xlu1 %2606  ;;  %v1759_v36 = vpop.f32.mrf.mxu0 }
 0x35a   : > { %v2616_v37 = vsel %vm1417_vm8, %v2605_v18, %v2607_v13  ;;  %v2617_v26 = vsel %vm1417_vm8, %v2607_v13, %v2609_v38 }
 0x35b   : > { %2639 = vmatpush.bf16.msrb.mxu3 %v2616_v37 }
 0x35e   : > { %3280 = vmatmul.msk.bf16.gmra.mxu2 %vm517_vm1, %v3387_v7  ;;  %3283 = vmatmul.msk.bf16.vlgmr.msrb.gmra.mxu0 %vm517_vm1, %v3386_v35 }
 0x35f   : > { %2657 = vmatpush.bf16.msrb.mxu0 %v2619_v11  ;;  %v1776_v30 = vpop.f32.mrf.mxu1 }
 0x360   : > { %v1743_v20 = vpop.f32.mrf.mxu3  ;;  %3282 = vmatmul.msk.bf16.gmra.mxu3 %vm517_vm1, %v3387_v7 }
 0x361   : > { %v1762_v23 = vpop.f32.mrf.mxu0 }
 0x362   : > { %3293 = vmatmul.msk.bf16.vlgmr.msrb.gmra.mxu1 %vm517_vm1, %v3388_v46 }
 0x363   : > { %2658 = vmatpush.bf16.msrb.mxu0 %v2617_v26  ;;  %2676 = vmatpush.bf16.msrb.mxu1 %v2615_v53 }
 0x367   : > { %v1778_v8 = vpop.f32.mrf.mxu1  ;;  %2677 = vmatpush.bf16.msrb.mxu1 %v2609_v38 }
 0x368   : > { %v1745_v60 = vpop.f32.mrf.mxu3 }
 0x369   : > { %v1764_v43 = vpop.f32.mrf.mxu0 }
 0x36e   : > { %3284 = vmatmul.msk.bf16.gmra.mxu0 %vm517_vm1, %v3387_v7  ;;  %3295 = vmatmul.msk.bf16.vlgmr.msra.gmra.mxu2 %vm517_vm1, %v3388_v46 }
 0x36f   : > { %v1781_v56 = vpop.f32.mrf.mxu1 }
 0x370   : > { %v1858_v21 = vpop.f32.mrf.mxu3  ;;  %3297 = vmatmul.msk.bf16.vlgmr.msra.gmra.mxu3 %vm517_vm1, %v3388_v46 }
 0x371   : > { %v1859_v32 = vadd.f32 %v1858_v21, %v1757_v0  ;;  %v1839_v62 = vpop.f32.mrf.mxu2  ;;  %v3393_v0 = vld [vmem:[#allocation9 + $0x88] sm:$0xff] }
 0x372   : > { %v1840_v28 = vadd.f32 %v1839_v62, %v1738_v59  ;;  %3294 = vmatmul.msk.bf16.gmra.mxu1 %vm517_vm1, %v3389_v47 }
 0x377   : > { %v1783_v33 = vpop.f32.mrf.mxu1 }
 0x378   : > { %v1860_v44 = vpop.f32.mrf.mxu3 }
 0x379   : > { %v1861_v39 = vadd.f32 %v1860_v44, %v1759_v36  ;;  %v1841_v31 = vpop.f32.mrf.mxu2 }
 0x37a   : > { %v1842_v45 = vadd.f32 %v1841_v31, %v1740_v17 }
 0x37b   : > { %v1877_v2 = vpop.f32.mrf.mxu0 }
 0x37c   : > { %v1878_v25 = vadd.f32 %v1877_v2, %v1776_v30 }
 0x37e   : > { %3296 = vmatmul.msk.bf16.gmra.mxu2 %vm517_vm1, %v3389_v47  ;;  %3307 = vmatmul.msk.bf16.vlgmr.msra.gmra.mxu0 %vm517_vm1, %v3390_v12 }
 0x37f   : > { %v1945_v1 = vpop.f32.mrf.mxu1 }
 0x380   : > { %v1863_v50 = vpop.f32.mrf.mxu3  ;;  %3298 = vmatmul.msk.bf16.gmra.mxu3 %vm517_vm1, %v3389_v47  ;;  %v1993_v61 = vadd.f32 %v1945_v1, %v1840_v28 }
 0x381   : > { %v1864_v41 = vadd.f32 %v1863_v50, %v1762_v23  ;;  %v1844_v14 = vpop.f32.mrf.mxu2 }
 0x382   : > { %v1845_v6 = vadd.f32 %v1844_v14, %v1743_v20  ;;  %3309 = vmatmul.msk.bf16.vlgmr.msra.gmra.mxu1 %vm517_vm1, %v3390_v12 }
 0x383   : > { %v1879_v10 = vpop.f32.mrf.mxu0 }
 0x384   : > { %v1880_v5 = vadd.f32 %v1879_v10, %v1778_v8 }
 0x387   : > { %v1947_v34 = vpop.f32.mrf.mxu1 }
 0x388   : > { %v1865_v3 = vpop.f32.mrf.mxu3  ;;  %v1996_v19 = vadd.f32 %v1947_v34, %v1842_v45 }
 0x389   : > { %v1866_v57 = vadd.f32 %v1865_v3, %v1764_v43  ;;  %v1846_v54 = vpop.f32.mrf.mxu2 }
 0x38a   : > { %v1847_v27 = vadd.f32 %v1846_v54, %v1745_v60 }
 0x38b   : > { %v1882_v58 = vpop.f32.mrf.mxu0 }
 0x38c   : > { %v1883_v15 = vadd.f32 %v1882_v58, %v1781_v56 }
 0x38e   : > { %3308 = vmatmul.msk.bf16.gmra.mxu0 %vm517_vm1, %v3391_v48  ;;  %3311 = vmatmul.msk.bf16.vlgmr.msrb.gmra.mxu2 %vm517_vm1, %v3390_v12 }
 0x38f   : > { %v1950_v63 = vpop.f32.mrf.mxu1 }
 0x390   : > { %3321 = vmatmul.msk.bf16.vlgmr.msrb.gmra.mxu3 %vm517_vm1, %v3392_v9  ;;  %v1999_v52 = vadd.f32 %v1950_v63, %v1845_v6 }
 0x391   : > { %v1964_v16 = vpop.f32.mrf.mxu2 }
 0x392   : > { %v1994_v51 = vadd.f32 %v1964_v16, %v1859_v32  ;;  %3310 = vmatmul.msk.bf16.gmra.mxu1 %vm517_vm1, %v3391_v48 }
 0x393   : > { %v1983_v42 = vpop.f32.mrf.mxu3  ;;  %v1884_v40 = vpop.f32.mrf.mxu0 }
 0x394   : > { %v1995_v4 = vadd.f32 %v1983_v42, %v1878_v25  ;;  %v1885_v29 = vadd.f32 %v1884_v40, %v1783_v33 }
 0x397   : > { %v1952_v22 = vpop.f32.mrf.mxu1 }
 0x398   : > { %v2002_v35 = vadd.f32 %v1952_v22, %v1847_v27 }
 0x399   : > { %v1966_v59 = vpop.f32.mrf.mxu2 }
 0x39a   : > { %v1997_v24 = vadd.f32 %v1966_v59, %v1861_v39 }
 0x39b   : > { %v1985_v49 = vpop.f32.mrf.mxu3  ;;  %v2063_v17 = vpop.f32.mrf.mxu0 }
 0x39c   : > { %v1998_v55 = vadd.f32 %v1985_v49, %v1880_v5  ;;  %v2111_v18 = vadd.f32 %v2063_v17, %v1993_v61 }
 0x39e   : > { %3312 = vmatmul.msk.bf16.gmra.mxu2 %vm517_vm1, %v3391_v48  ;;  %3323 = vmatmul.msk.bf16.vlgmr.msrb.gmra.mxu0 %vm517_vm1, %v3392_v9 }
 0x39f   : > { %v2082_v13 = vpop.f32.mrf.mxu1 }
 0x3a0   : > { %3322 = vmatmul.msk.bf16.gmra.mxu3 %vm517_vm1, %v3393_v0  ;;  %v2112_v37 = vadd.f32 %v2082_v13, %v1994_v51 }
 0x3a1   : > { %v1969_v7 = vpop.f32.mrf.mxu2 }
 0x3a2   : > { %v2000_v53 = vadd.f32 %v1969_v7, %v1864_v41  ;;  %3325 = vmatmul.msk.bf16.vlgmr.msrb.gmra.mxu1 %vm517_vm1, %v3392_v9 }
 0x3a3   : > { %v1988_v11 = vpop.f32.mrf.mxu3  ;;  %v2065_v30 = vpop.f32.mrf.mxu0 }
 0x3a4   : > { %v2001_v20 = vadd.f32 %v1988_v11, %v1883_v15  ;;  %v2114_v46 = vadd.f32 %v2065_v30, %v1996_v19 }
 0x3a7   : > { %v2084_v36 = vpop.f32.mrf.mxu1 }
 0x3a8   : > { %v2115_v38 = vadd.f32 %v2084_v36, %v1997_v24 }
 0x3a9   : > { %v1971_v26 = vpop.f32.mrf.mxu2 }
 0x3aa   : > { %v2003_v60 = vadd.f32 %v1971_v26, %v1866_v57 }
 0x3ab   : > { %v1990_v8 = vpop.f32.mrf.mxu3  ;;  %v2068_v21 = vpop.f32.mrf.mxu0 }
 0x3ac   : > { %v2004_v23 = vadd.f32 %v1990_v8, %v1885_v29  ;;  %v2117_v32 = vadd.f32 %v2068_v21, %v1999_v52 }
 0x3ae   : > { %3324 = vmatmul.msk.bf16.gmra.mxu0 %vm517_vm1, %v3393_v0 }
 0x3af   : > { %v2087_v47 = vpop.f32.mrf.mxu1 }
 0x3b0   : > { %v2118_v56 = vadd.f32 %v2087_v47, %v2000_v53 }
 0x3b1   : > { %v2101_v62 = vpop.f32.mrf.mxu2 }
 0x3b2   : > { %v2113_v28 = vadd.f32 %v2101_v62, %v1995_v4  ;;  %3326 = vmatmul.msk.bf16.gmra.mxu1 %vm517_vm1, %v3393_v0 }
 0x3b3   : > { %v2193_v43 = vpop.f32.mrf.mxu3  ;;  %v2070_v39 = vpop.f32.mrf.mxu0 }
 0x3b4   : > { %v4633_v44 = vadd.f32 %v2193_v43, %v2111_v18  ;;  %v2120_v33 = vadd.f32 %v2070_v39, %v2002_v35 }
 0x3b7   : > { %v2089_v31 = vpop.f32.mrf.mxu1 }
 0x3b8   : > { %v2121_v45 = vadd.f32 %v2089_v31, %v2003_v60 }
 0x3b9   : > { %v2103_v12 = vpop.f32.mrf.mxu2 }
 0x3ba   : > { %v2116_v2 = vadd.f32 %v2103_v12, %v1998_v55 }
 0x3bb   : > { %v2195_v25 = vpop.f32.mrf.mxu3  ;;  %v2212_v41 = vpop.f32.mrf.mxu0 }
 0x3bc   : > { %v4636_v50 = vadd.f32 %v2195_v25, %v2114_v46  ;;  %v2242_v1 = vadd.f32 %v2212_v41, %v2112_v37  ;;  %v2708_v41 = vpop.permute.xlu1 %2707 }
 0x3bf   : > { %v2231_v61 = vpop.f32.mrf.mxu1 }
 0x3c0   : > { %v4638_v14 = vadd.f32 %v2231_v61, %v2113_v28 }
 0x3c1   : > { %v2106_v6 = vpop.f32.mrf.mxu2 }
 0x3c2   : > { %v2119_v10 = vadd.f32 %v2106_v6, %v2001_v20 }
 0x3c3   : > { %v2198_v5 = vpop.f32.mrf.mxu3  ;;  %v2214_v57 = vpop.f32.mrf.mxu0 }
 0x3c4   : > { %v4640_v3 = vadd.f32 %v2198_v5, %v2117_v32  ;;  %v2245_v34 = vadd.f32 %v2214_v57, %v2115_v38 }
 0x3c7   : > { %v2233_v19 = vpop.f32.mrf.mxu1 }
 0x3c8   : > { %v4642_v54 = vadd.f32 %v2233_v19, %v2116_v2 }
 0x3c9   : > { %v2108_v27 = vpop.f32.mrf.mxu2 }
 0x3ca   : > { %v2122_v48 = vadd.f32 %v2108_v27, %v2004_v23  ;;  %v2773_v27 = vld [vmem:[%s3900_s27] sm:$0xff] }
 0x3cb   : > { %v2200_v58 = vpop.f32.mrf.mxu3  ;;  %v2217_v15 = vpop.f32.mrf.mxu0 }
 0x3cc   : > { %v4644_v9 = vadd.f32 %v2200_v58, %v2120_v33  ;;  %v2248_v63 = vadd.f32 %v2217_v15, %v2118_v56  ;;  %v4674_v33 = vpop.permute.xlu2 %2712 }
 0x3cf   : > { %v2236_v52 = vpop.f32.mrf.mxu1 }
 0x3d0   : > { %v4646_v16 = vadd.f32 %v2236_v52, %v2119_v10  ;;  %v4683_v10 = vpop.permute.xlu0 %2717 }
 0x3d1   : > { %v2305_v51 = vpop.f32.mrf.mxu2 }
 0x3d3   : > { %v2324_v42 = vpop.f32.mrf.mxu3  ;;  %v2219_v40 = vpop.f32.mrf.mxu0 }
 0x3d4   : > { %v2354_v4 = vadd.f32 %v2324_v42, %v2242_v1  ;;  %v2251_v29 = vadd.f32 %v2219_v40, %v2121_v45  ;;  %v2353_v45 = vadd.f32 %v2305_v51, %v4633_v44 }
 0x3d7   : > { %v2238_v22 = vpop.f32.mrf.mxu1 }
 0x3d8   : > { %v4648_v35 = vadd.f32 %v2238_v22, %v2122_v48 }
 0x3d9   : > { %v2307_v59 = vpop.f32.mrf.mxu2 }
 0x3da   : > { %v2356_v5 = vadd.f32 %v2307_v59, %v4636_v50  ;;  %v4690_v59 = vpop.permute.xlu1 %2722 }
 0x3db   : > { %v2326_v24 = vpop.f32.mrf.mxu3  ;;  %v2343_v55 = vpop.f32.mrf.mxu0 }
 0x3dc   : > { %v4650_v49 = vadd.f32 %v2326_v24, %v2245_v34  ;;  %v2744_v34 = vpop.permute.xlu2 %2743  ;;  %v2355_v40 = vadd.f32 %v2343_v55, %v4638_v14 }
 0x3df   : > { %v2417_v17 = vpop.f32.mrf.mxu1 }
 0x3e0   : > { %v2465_v12 = vadd.f32 %v2417_v17, %v2353_v45 }
 0x3e1   : > { %v2310_v0 = vpop.f32.mrf.mxu2 }
 0x3e2   : > { %v2359_v17 = vadd.f32 %v2310_v0, %v4640_v3 }
 0x3e3   : > { %v2329_v18 = vpop.f32.mrf.mxu3  ;;  %v4654_v37 = vpop.f32.mrf.mxu0 }
 0x3e4   : > { %v4652_v13 = vadd.f32 %v2329_v18, %v2248_v63 }
 0x3e7   : > { %v2419_v7 = vpop.f32.mrf.mxu1 }
 0x3e8   : > { %v2468_v48 = vadd.f32 %v2419_v7, %v2356_v5  ;;  %v2749_v7 = vpop.permute.xlu0 %2748 }
 0x3e9   : > { %v4656_v53 = vpop.f32.mrf.mxu2 }
 0x3eb   : > { %v2331_v11 = vpop.f32.mrf.mxu3  ;;  %v4660_v30 = vpop.f32.mrf.mxu0 }
 0x3ec   : > { %v4658_v20 = vadd.f32 %v2331_v11, %v2251_v29  ;;  %v2776_v11 = vld [vmem:[%s3900_s27 + $0x18] sm:$0xff] }
 0x3ef   : > { %v2422_v46 = vpop.f32.mrf.mxu1 }
 0x3f0   : > { %v2471_v55 = vadd.f32 %v2422_v46, %v2359_v17  ;;  %v2358_v46 = vadd.f32 %v4654_v37, %v4642_v54  ;;  %v2779_v54 = vld [vmem:[%s3900_s27 + $0x30] sm:$0xff] }
 0x3f1   : > { %v2436_v36 = vpop.f32.mrf.mxu2 }
 0x3f2   : > { %v2466_v58 = vadd.f32 %v2436_v36, %v2354_v4 }
 0x3f3   : > { %v2455_v38 = vpop.f32.mrf.mxu3  ;;  %v4662_v26 = vpop.f32.mrf.mxu0 }
 0x3f4   : > { %v2467_v18 = vadd.f32 %v2455_v38, %v2355_v40 }
 0x3f7   : > { %v4664_v60 = vpop.f32.mrf.mxu1 }
 0x3f9   : > { %v2438_v8 = vpop.f32.mrf.mxu2 }
 0x3fb   : > { %v4666_v23 = vpop.f32.mrf.mxu3  ;;  %v2529_v21 = vpop.f32.mrf.mxu0 }
 0x3fc   : > { %v2577_v25 = vadd.f32 %v2529_v21, %v2465_v12 }
 0x3ff   : > { %v2548_v32 = vpop.f32.mrf.mxu1 }
 0x400   : > { %v2578_v51 = vadd.f32 %v2548_v32, %v2466_v58  ;;  %v2774_v32 = vld [vmem:[%s3900_s27 + $0x8] sm:$0xff] }
 0x401   : > { %v4668_v47 = vpop.f32.mrf.mxu2 }
 0x403   : > { %v4670_v56 = vpop.f32.mrf.mxu3  ;;  %v2531_v62 = vpop.f32.mrf.mxu0 }
 0x404   : > { %v2580_v63 = vadd.f32 %v2531_v62, %v2468_v48  ;;  %v2469_v62 = vadd.f32 %v2438_v8, %v4650_v49  ;;  %v2775_v48 = vld [vmem:[%s3900_s27 + $0x10] sm:$0xff] }
 0x407   : > { %v2550_v28 = vpop.f32.mrf.mxu1 }
 0x409   : > { %v4676_v31 = vpop.f32.mrf.mxu2 }
 0x40b   : > { %v4672_v43 = vpop.f32.mrf.mxu3  ;;  %v2534_v39 = vpop.f32.mrf.mxu0 }
 0x40c   : > { %v2583_v38 = vadd.f32 %v2534_v39, %v2471_v55  ;;  %v2362_v39 = vadd.f32 %v4656_v53, %v4644_v9  ;;  %v2472_v9 = vadd.f32 %v4668_v47, %v4652_v13  ;;  %v2361_v13 = vadd.f32 %v4660_v30, %v4646_v16  ;;  %v2782_v16 = vld [vmem:[%s3900_s27 + $0x48] sm:$0xff] }
 0x40f   : > { %v4679_v2 = vpop.f32.mrf.mxu1 }
 0x411   : > { %v2567_v19 = vpop.f32.mrf.mxu2 }
 0x412   : > { %v2579_v36 = vadd.f32 %v2567_v19, %v2467_v18 }
 0x413   : > { %v2641_v1 = vpop.f32.mrf.mxu3  ;;  %v4681_v6 = vpop.f32.mrf.mxu0 }
 0x414   : > { %v2689_v61 = vadd.f32 %v2641_v1, %v2577_v25  ;;  %v2581_v1 = vadd.f32 %v2550_v28, %v2469_v62  ;;  %v2470_v28 = vadd.f32 %v4666_v23, %v2358_v46 }
 0x416   : > { %v2725_v57 = vmul.f32 %v2708_v41, %v2689_v61 }
 0x417   : > { %v4687_v15 = vpop.f32.mrf.mxu1 }
 0x418   : > { %v2761_v44 = vadd.f32 %v2744_v34, %v2725_v57 }
 0x419   : > { %v2569_v45 = vpop.f32.mrf.mxu2 }
 0x41a   : > { %v2785_v52 = vadd.f32 %v2773_v27, %v2761_v44 }
 0x41b   : > { %v2643_v42 = vpop.f32.mrf.mxu3  ;;  %v2660_v22 = vpop.f32.mrf.mxu0 }
 0x41c   : > { %v2797_v29 = vmax.f32 %v2785_v52, 0.0  ;;  %v2692_v50 = vadd.f32 %v2643_v42, %v2580_v63  ;;  %v2690_v24 = vadd.f32 %v2660_v22, %v2578_v51  ;;  %v2754_v52 = vpop.permute.xlu1 %2753  ;;  %v2582_v51 = vadd.f32 %v2569_v45, %v2470_v28  ;;  %v2759_v45 = vpop.permute.xlu2 %2758 }
 0x41e   : > { %2809 = vst [vmem:[%s4695_s29] sm:$0xff] %v2797_v29  ;;  %v2728_v4 = vmul.f32 %v4674_v33, %v2692_v50  ;;  %v2726_v14 = vmul.f32 %v2708_v41, %v2690_v24  ;;  %v2777_v29 = vld [vmem:[%s3900_s27 + $0x20] sm:$0xff] }
 0x41f   : > { %v2679_v0 = vpop.f32.mrf.mxu1 }
 0x420   : > { %v2764_v21 = vadd.f32 %v2749_v7, %v2728_v4  ;;  %v2762_v3 = vadd.f32 %v2744_v34, %v2726_v14  ;;  %v2691_v25 = vadd.f32 %v2679_v0, %v2579_v36  ;;  %v2778_v36 = vld [vmem:[%s3900_s27 + $0x28] sm:$0xff] }
 0x421   : > { %v2572_v17 = vpop.f32.mrf.mxu2 }
 0x422   : > { %v2788_v12 = vadd.f32 %v2776_v11, %v2764_v21  ;;  %v2786_v61 = vadd.f32 %v2774_v32, %v2762_v3  ;;  %v2727_v19 = vmul.f32 %v2708_v41, %v2691_v25  ;;  %v2474_v41 = vadd.f32 %v4664_v60, %v2362_v39 }
 0x423   : > { %v2646_v5 = vpop.f32.mrf.mxu3  ;;  %v2662_v49 = vpop.f32.mrf.mxu0  ;;  %v2584_v60 = vadd.f32 %v4679_v2, %v2472_v9  ;;  %v2473_v2 = vadd.f32 %v4670_v56, %v2361_v13 }
 0x424   : > { %v2800_v57 = vmax.f32 %v2788_v12, 0.0  ;;  %v2695_v27 = vadd.f32 %v2646_v5, %v2583_v38  ;;  %v2798_v8 = vmax.f32 %v2786_v61, 0.0  ;;  %v2693_v44 = vadd.f32 %v2662_v49, %v2581_v1  ;;  %v2780_v38 = vld [vmem:[%s3900_s27 + $0x38] sm:$0xff] }
 0x425   : > { %v2763_v58 = vadd.f32 %v2744_v34, %v2727_v19  ;;  %v2586_v34 = vadd.f32 %v4681_v6, %v2474_v41  ;;  %v2585_v3 = vadd.f32 %v2572_v17, %v2473_v2  ;;  %v2475_v12 = vadd.f32 %v4676_v31, %v4658_v20  ;;  %v2784_v41 = vld [vmem:[%s3900_s27 + $0x58] sm:$0xff] }
 0x426   : > { %2813 = vst [vmem:[%s4695_s29 + $0x18] sm:$0xff] %v2800_v57  ;;  %v2731_v63 = vmul.f32 %v4683_v10, %v2695_v27  ;;  %v2729_v37 = vmul.f32 %v4674_v33, %v2693_v44  ;;  %v2364_v57 = vadd.f32 %v4662_v26, %v4648_v35 }
 0x427   : > { %2810 = vst [vmem:[%s4695_s29 + $0x8] sm:$0xff] %v2798_v8  ;;  %v2787_v42 = vadd.f32 %v2775_v48, %v2763_v58  ;;  %v2681_v23 = vpop.f32.mrf.mxu1  ;;  %v2587_v5 = vadd.f32 %v4687_v15, %v2475_v12  ;;  %v2781_v8 = vld [vmem:[%s3900_s27 + $0x40] sm:$0xff] }
 0x428   : > { %v2767_v40 = vadd.f32 %v2754_v52, %v2731_v63  ;;  %v2765_v53 = vadd.f32 %v2749_v7, %v2729_v37  ;;  %v2694_v24 = vadd.f32 %v2681_v23, %v2582_v51  ;;  %v2476_v44 = vadd.f32 %v4672_v43, %v2364_v57 }
 0x429   : > { %v2799_v50 = vmax.f32 %v2787_v42, 0.0  ;;  %v2574_v27 = vpop.f32.mrf.mxu2 }
 0x42a   : > { %v2791_v22 = vadd.f32 %v2779_v54, %v2767_v40  ;;  %v2789_v18 = vadd.f32 %v2777_v29, %v2765_v53  ;;  %v2730_v11 = vmul.f32 %v4674_v33, %v2694_v24  ;;  %v2588_v26 = vadd.f32 %v2574_v27, %v2476_v44 }
 0x42b   : > { %v2648_v4 = vpop.f32.mrf.mxu3  ;;  %2812 = vst.msk [vmem:[%s4695_s29 + $0x10] sm:$0xff] %vm2811_vm10, %v2799_v50  ;;  %v2665_v14 = vpop.f32.mrf.mxu0 }
 0x42c   : > { %v2803_v47 = vmax.f32 %v2791_v22, 0.0  ;;  %v2698_v6 = vadd.f32 %v2648_v4, %v2586_v34  ;;  %v2801_v55 = vmax.f32 %v2789_v18, 0.0  ;;  %v2696_v21 = vadd.f32 %v2665_v14, %v2584_v60 }
 0x42d   : > { %v2766_v32 = vadd.f32 %v2749_v7, %v2730_v11 }
 0x42e   : > { %2816 = vst [vmem:[%s4695_s29 + $0x30] sm:$0xff] %v2803_v47  ;;  %v2734_v62 = vmul.f32 %v4690_v59, %v2698_v6  ;;  %v2732_v30 = vmul.f32 %v4683_v10, %v2696_v21 }
 0x42f   : > { %2814 = vst [vmem:[%s4695_s29 + $0x20] sm:$0xff] %v2801_v55  ;;  %v2790_v33 = vadd.f32 %v2778_v36, %v2766_v32  ;;  %v2684_v56 = vpop.f32.mrf.mxu1 }
 0x430   : > { %v2770_v0 = vadd.f32 %v2759_v45, %v2734_v62  ;;  %v2768_v25 = vadd.f32 %v2754_v52, %v2732_v30  ;;  %v2697_v61 = vadd.f32 %v2684_v56, %v2585_v3 }
 0x431   : > { %v2802_v7 = vmax.f32 %v2790_v33, 0.0 }
 0x432   : > { %v2794_v1 = vadd.f32 %v2782_v16, %v2770_v0  ;;  %v2792_v46 = vadd.f32 %v2780_v38, %v2768_v25  ;;  %v2733_v20 = vmul.f32 %v4683_v10, %v2697_v61  ;;  %v2783_v10 = vld [vmem:[%s3900_s27 + $0x50] sm:$0xff] }
 0x433   : > { %2815 = vst.msk [vmem:[%s4695_s29 + $0x28] sm:$0xff] %vm2811_vm10, %v2802_v7  ;;  %v2667_v31 = vpop.f32.mrf.mxu0 }
 0x434   : > { %v2806_v19 = vmax.f32 %v2794_v1, 0.0  ;;  %v2804_v49 = vmax.f32 %v2792_v46, 0.0  ;;  %v2699_v48 = vadd.f32 %v2667_v31, %v2587_v5  ;;  %v2769_v15 = vadd.f32 %v2754_v52, %v2733_v20 }
 0x436   : > { %2819 = vst [vmem:[%s4695_s29 + $0x48] sm:$0xff] %v2806_v19  ;;  %v2735_v35 = vmul.f32 %v4690_v59, %v2699_v48  ;;  %v2793_v39 = vadd.f32 %v2781_v8, %v2769_v15 }
 0x437   : > { %2817 = vst [vmem:[%s4695_s29 + $0x38] sm:$0xff] %v2804_v49  ;;  %v2686_v58 = vpop.f32.mrf.mxu1 }
 0x438   : > { %v2771_v28 = vadd.f32 %v2759_v45, %v2735_v35  ;;  %v2805_v63 = vmax.f32 %v2793_v39, 0.0  ;;  %v2700_v54 = vadd.f32 %v2686_v58, %v2588_v26 }
 0x43a   : > { %v2795_v37 = vadd.f32 %v2783_v10, %v2771_v28  ;;  %2818 = vst.msk [vmem:[%s4695_s29 + $0x40] sm:$0xff] %vm2811_vm10, %v2805_v63  ;;  %v2736_v43 = vmul.f32 %v4690_v59, %v2700_v54 }
 0x43c   : > { %v2807_v52 = vmax.f32 %v2795_v37, 0.0  ;;  %v2772_v51 = vadd.f32 %v2759_v45, %v2736_v43 }
 0x43e   : > { %2820 = vst [vmem:[%s4695_s29 + $0x50] sm:$0xff] %v2807_v52  ;;  %v2796_v42 = vadd.f32 %v2784_v41, %v2772_v51 }
 0x440   : > { %v2808_v40 = vmax.f32 %v2796_v42, 0.0 }
 0x442   : > { %2821 = vst.msk [vmem:[%s4695_s29 + $0x58] sm:$0xff] %vm2811_vm10, %v2808_v40 }
 0x443   : > { %3644 = shalt.err (!%p3641_p2)
}
 0x444   : > { %s3714_s21 = smov 384   ;;  %s3715_s30 = smov 24  }
 0x445   : > { %3417 = dma.vmem_to_hbm [thread:$0]  (%p3832_p3), %s2836_s19, 1536, %s2838_s11, %s2823_s23, %s3714_s21, %s3714_s21, %s3715_s30  }
 0x446 PF: > { %s4855_s14 = sld [smem:[#allocation17_spill]]  ;;  %p4857_p12 = scmp.ge.s32.totalorder %s3695_s12, 2 }
 0x448   : > { %p3434_p13 = pnand %p4857_p12, %p3801_p6 }
 0x44a   : > { %p3435_p0 = pneg %p3434_p13 }
 0x44c   : > { %s2852_s16 = sand.u32 1, %s4855_s14  }
 0x44d   : > { %s2853_s18 = scalar_lea.sflag [#allocation5], %s2852_s16 }
 0x44e   : > { %3678 = dma.done.wait (%p3435_p0), %s2853_s18, 1536  }
 0x44f   : > { %3680 = vsyncadd (%p3435_p0), %s2853_s18, 4294965760  ;;  %s4858_s12 = sld [smem:[#allocation20_spill]]  ;;  %s4861_s30 = smov %s3687_s10 }
 0x450   : > { %s4859_s29 = sld [smem:[#allocation18_spill]] }
 0x451   : > { %s4860_s11 = sld [smem:[#allocation22_spill]] }
 0x455   : > { %p26_p5 = scmp.ge.s32.totalorder %s4858_s12, 4  }
 0x456   : > { %s4862_s10 = smov %s4859_s29 }
 0x457   :  { %28 = sbr.rel (!%p26_p5) target bundleno = 12 (0xc), region = 138 }
 0x45c   :  { %2859 = vsyncpa [#allocation4], 1 }
 0x45d   :  { %2861 = vsyncpa [#allocation4 + $0x1], 1 }
 0x45e   :  { %2862 = vsyncpa [#allocation7], 1 }
 0x45f   :  { %2864 = vsyncpa [#allocation7 + $0x1], 1 }
 0x460   :  { %2865 = vsyncpa [#allocation10], 1 }
 0x461   :  { %2866 = vsyncpa [#allocation5], 1 }
 0x462   :  { %2868 = vsyncpa [#allocation5 + $0x1], 1 }

</bundles_post_ra>
